<compile_context>
chip_gen: v7x
topology: tpu7x:2x2x1
jax: 0.10.0
libtpu: 0.0.40
codegen_flags: <defaults>
</compile_context>

<pallas_src>
import functools

import jax
import jax.numpy as jnp
from jax import lax
from jax.experimental import pallas as pl
from jax.experimental.pallas import tpu as pltpu


def _answer_score_kernel(k, lamda, eps,
                         s_ref, m_ref, mask_ref,
                         w2t_ref, b2_ref, wct_ref, bc_ref,
                         wiht_ref, bih_ref, w4t_ref, b4_ref,
                         w5_ref, b5_ref,
                         out_ref):
    bt, C, H4 = s_ref.shape            # C == 3 candidates, folded batch-major
    _, L, H2 = m_ref.shape
    H12 = 3 * H4
    f32, bf16 = jnp.float32, jnp.bfloat16

    m = m_ref[...]                                         # (bt, L, 2H) f32
    m_bf = m.astype(bf16)
    st = s_ref[...].reshape(bt * C, H4)                    # (3bt, 4H), row = b*3 + c

    # Additive attention bias from the mask: 0 where valid, -inf where padded.
    # Broadcast over the candidate axis in-kernel; never materialized per candidate.
    att_bias = jnp.where(mask_ref[...] == 0.0, -jnp.inf, 0.0)     # (bt, 1, L)

    # w2(m): candidate- AND hop-invariant -> computed exactly once.
    mtt = (jnp.dot(m_bf.reshape(bt * L, H2), w2t_ref[...],
                   preferred_element_type=f32) + b2_ref[...]).reshape(bt, L, H2)
    norm_m_sq = jnp.sum(mtt * mtt, axis=-1)                # (bt, L) f32
    mtt_bf = mtt.astype(bf16)

    wct, wiht, w4t = wct_ref[...], wiht_ref[...], w4t_ref[...]
    bc, bih = bc_ref[...], bih_ref[...]

    # Batched MXU contractions (batch over bt):
    #   dots : (bt,3,2H) x (bt,L,2H) -> (bt,3,L)   (contract 2H)
    #   f_att: (bt,3,L)  x (bt,L,2H) -> (bt,3,2H)  (contract L)
    dn_dots = (((2,), (2,)), ((0,), (0,)))
    dn_fatt = (((2,), (1,)), ((0,), (0,)))

    # k is small and static -> keep unrolled.
    # TODO(synk): switch to lax.fori_loop with st as the carry if k grows past ~4.
    for _ in range(k):
        # Fused st projection: one dot yields the GRU hidden-side gates (W_hh)
        # and w3(st).  Slice boundaries are lane-aligned when H % 32 == 0.
        comb = jnp.dot(st.astype(bf16), wct,
                       preferred_element_type=f32) + bc            # (3bt, 14H)
        gh = comb[:, :H12]                                         # (3bt, 12H) [r|z|n]
        stt3 = comb[:, H12:].reshape(bt, C, H2)                    # (bt, 3, 2H) w3(st)

        # Cosine-similarity attention: scores on the MXU, rsqrt on the EUP.
        dots = lax.dot_general(stt3.astype(bf16), mtt_bf, dn_dots,
                               preferred_element_type=f32)         # (bt, 3, L)
        norm_s_sq = jnp.sum(stt3 * stt3, axis=-1)                  # (bt, 3)
        denom_sq = jnp.maximum(norm_m_sq[:, None, :] * norm_s_sq[:, :, None],
                               eps * eps)                          # (bt, 3, L)
        att = lamda * dots * lax.rsqrt(denom_sq) + att_bias        # (bt, 3, L)

        # softmax over L
        att_max = jnp.max(att, axis=-1, keepdims=True)
        p = jnp.exp(att - att_max)
        att_n = p * pl.reciprocal(jnp.sum(p, axis=-1, keepdims=True), approx=True)

        # Attention-weighted read of m (MXU), then GRUCell update.
        f_att = lax.dot_general(att_n.astype(bf16), m_bf, dn_fatt,
                                preferred_element_type=f32)        # (bt, 3, 2H)
        f_att = f_att.reshape(bt * C, H2)
        # dropout(f_att): identity at inference

        # GRUCell(input=2H, hidden=4H); gate layout [r | z | n].
        gx = jnp.dot(f_att.astype(bf16), wiht,
                     preferred_element_type=f32) + bih             # (3bt, 12H)
        r = jax.nn.sigmoid(gx[:, :H4] + gh[:, :H4])
        z = jax.nn.sigmoid(gx[:, H4:2 * H4] + gh[:, H4:2 * H4])
        n = jnp.tanh(gx[:, 2 * H4:] + r * gh[:, 2 * H4:])
        st = (1.0 - z) * n + z * st

    # dropout(st): identity at inference
    hidden = jnp.maximum(
        jnp.dot(st.astype(bf16), w4t, preferred_element_type=f32) + b4_ref[...], 0.0)
    logits = jnp.sum(hidden.reshape(bt, C, H4) * w5_ref[...][None, :, :],
                     axis=-1) + b5_ref[...]                        # (bt, 3)

    # log_softmax over the 3 candidates; single contiguous store.
    mx = jnp.max(logits, axis=-1, keepdims=True)
    lse = mx + jnp.log(jnp.sum(jnp.exp(logits - mx), axis=-1, keepdims=True))
    out_ref[...] = (logits - lse)[:, None, :]                      # (bt, 1, 3)


def make_params(hidden_size, key):
    """Deterministic synthetic parameters (shapes follow AnswerScore.__init__).

    Biases are small but nonzero so the bias-broadcast paths are exercised
    (reset_parameters() zeroes them, but forward() supports arbitrary values)."""
    H2, H4 = 2 * hidden_size, 4 * hidden_size
    ks = jax.random.split(key, 12)

    def u(k, shape, scale=0.1):
        return jax.random.uniform(k, shape, jnp.float32, -scale, scale)

    return dict(
        w2=u(ks[0], (H2, H2)),       b2=u(ks[6], (H2,), 0.05),
        w3=u(ks[1], (H2, H4)),       b3=u(ks[7], (H2,), 0.05),
        w4=u(ks[2], (H4, H4)),       b4=u(ks[8], (H4,), 0.05),
        w5=u(ks[3], (1, H4)),        b5=u(ks[9], (1,), 0.05),
        w_ih=u(ks[4], (3 * H4, H2)), b_ih=u(ks[10], (3 * H4,), 0.05),
        w_hh=u(ks[5], (3 * H4, H4)), b_hh=u(ks[11], (3 * H4,), 0.05),
    )


def prepare_params(params):
    """One-time conversion to kernel layout: pre-transposed bf16 weight tiles,
    f32 row-vector biases, and the fused [W_hh | w3] projection.  Call once and
    reuse — keeps the per-call wrapper free of transpose/cast XLA ops."""
    bf16, f32 = jnp.bfloat16, jnp.float32
    wct = jnp.concatenate([params['w_hh'].T, params['w3'].T], axis=1)   # (4H, 14H)
    bc = jnp.concatenate([params['b_hh'], params['b3']])[None, :]       # (1, 14H)
    return dict(
        w2t=params['w2'].T.astype(bf16),    b2=params['b2'][None, :].astype(f32),
        wct=wct.astype(bf16),               bc=bc.astype(f32),
        wiht=params['w_ih'].T.astype(bf16), bih=params['b_ih'][None, :].astype(f32),
        w4t=params['w4'].T.astype(bf16),    b4=params['b4'][None, :].astype(f32),
        w5=params['w5'].astype(f32),        b5=params['b5'][None, :].astype(f32),
    )


def answer_score(m, s1, s2, s3, m_mask, prep, *, k, lamda, eps=1e-8, batch_tile=None):
    """AnswerScore forward (eval mode).  `prep` = prepare_params(raw_params).

    batch_tile: batch rows per grid step.  Default = full batch (single step,
    best on 1-TC v5e/v6e).  On v7x set e.g. B // 2 (or a multiple of 8) so the
    "parallel" grid axis shards work across both TensorCores."""
    B, L, H2 = m.shape
    f32 = jnp.float32

    s = jnp.stack([s1, s2, s3], axis=1).astype(f32)        # (B, 3, 4H) batch-major
    mask3 = m_mask.astype(f32)[:, None, :]                 # (B, 1, L)

    bt = B if batch_tile is None else batch_tile
    grid = (pl.cdiv(B, bt),)

    def batched_spec(shape):
        nd = len(shape)
        return pl.BlockSpec((bt,) + tuple(shape[1:]),
                            lambda i: (i,) + (0,) * (nd - 1))

    def whole_spec(x):
        nd = x.ndim
        return pl.BlockSpec(x.shape, lambda i: (0,) * nd)

    weights = (prep['w2t'], prep['b2'], prep['wct'], prep['bc'],
               prep['wiht'], prep['bih'], prep['w4t'], prep['b4'],
               prep['w5'], prep['b5'])

    kernel = functools.partial(_answer_score_kernel, k, lamda, eps)
    out = pl.pallas_call(
        kernel,
        out_shape=jax.ShapeDtypeStruct((B, 1, 3), jnp.float32),
        grid=grid,
        in_specs=[batched_spec(s.shape), batched_spec(m.shape),
                  batched_spec(mask3.shape)] + [whole_spec(w) for w in weights],
        out_specs=pl.BlockSpec((bt, 1, 3), lambda i: (i, 0, 0)),
        compiler_params=pltpu.CompilerParams(
            dimension_semantics=("parallel",),
            vmem_limit_bytes=32 * 1024 * 1024),
    )(s, m.astype(f32), mask3, *weights)
    return out.reshape(B, 3)


def answer_score_ref(m, s1, s2, s3, m_mask, params, *, k, lamda, eps=1e-8):
    """Pure-JAX reference (mirrors the PyTorch forward, eval mode)."""
    def linear(x, w, b):
        return x @ w.T + b

    H4 = s1.shape[-1]
    mask0 = (m_mask == 0)
    results = []
    for st0 in (s1, s2, s3):
        st = st0
        for _ in range(k):
            stt = linear(st, params['w3'], params['b3'])
            mtt = linear(m, params['w2'], params['b2'])
            dots = jnp.sum(mtt * stt[:, None, :], axis=-1)
            nm = jnp.linalg.norm(mtt, axis=-1)
            ns = jnp.linalg.norm(stt, axis=-1, keepdims=True)
            att = lamda * dots / jnp.maximum(nm * ns, eps)
            att = jnp.where(mask0, -jnp.inf, att)
            att = jax.nn.softmax(att, axis=1)
            f_att = jnp.einsum('bl,ble->be', att, m)
            gx = linear(f_att, params['w_ih'], params['b_ih'])
            gh = linear(st, params['w_hh'], params['b_hh'])
            r = jax.nn.sigmoid(gx[:, :H4] + gh[:, :H4])
            z = jax.nn.sigmoid(gx[:, H4:2 * H4] + gh[:, H4:2 * H4])
            n = jnp.tanh(gx[:, 2 * H4:] + r * gh[:, 2 * H4:])
            st = (1.0 - z) * n + z * st
        st = jax.nn.relu(linear(st, params['w4'], params['b4']))
        results.append(linear(st, params['w5'], params['b5'])[:, 0])
    logits = jnp.stack(results, axis=1)
    return jax.nn.log_softmax(logits, axis=1)


if __name__ == "__main__":
    H = 32       # hidden_size
    B = 2        # batch
    L = 8        # m_len
    K = 2        # hops
    LAMDA = 2.0
    # dropout_p is irrelevant at inference (dropout = identity)

    key = jax.random.PRNGKey(0)
    kp, km, k1, k2, k3 = jax.random.split(key, 5)
    params = make_params(H, kp)
    prep = prepare_params(params)        # one-time weight layout / bf16 prep

    m = jax.random.normal(km, (B, L, 2 * H), jnp.float32)
    s1 = jax.random.normal(k1, (B, 4 * H), jnp.float32)
    s2 = jax.random.normal(k2, (B, 4 * H), jnp.float32)
    s3 = jax.random.normal(k3, (B, 4 * H), jnp.float32)
    # last two positions of each sequence are padding
    m_mask = jnp.ones((B, L), jnp.float32).at[:, L - 2:].set(0.0)

    out = answer_score(m, s1, s2, s3, m_mask, prep, k=K, lamda=LAMDA)
    out = jax.block_until_ready(out)

    ref = answer_score_ref(m, s1, s2, s3, m_mask, params, k=K, lamda=LAMDA)
    assert out.shape == (B, 3)
    assert bool(jnp.all(jnp.isfinite(out)))
    assert bool(jnp.allclose(out, ref, atol=1e-2, rtol=1e-2)), (out, ref)
    print("KERNEL_OK")
</pallas_src>

<mosaic_0001>
module attributes {stable_mosaic.version = 11 : i64} {
  func.func @_answer_score_kernel(%arg0: i32, %arg1: memref<2x3x128xf32, #tpu.memory_space<vmem>>, %arg2: memref<2x8x64xf32, #tpu.memory_space<vmem>>, %arg3: memref<2x1x8xf32, #tpu.memory_space<vmem>>, %arg4: memref<64x64xbf16, #tpu.memory_space<vmem>>, %arg5: memref<1x64xf32, #tpu.memory_space<vmem>>, %arg6: memref<128x448xbf16, #tpu.memory_space<vmem>>, %arg7: memref<1x448xf32, #tpu.memory_space<vmem>>, %arg8: memref<64x384xbf16, #tpu.memory_space<vmem>>, %arg9: memref<1x384xf32, #tpu.memory_space<vmem>>, %arg10: memref<128x128xbf16, #tpu.memory_space<vmem>>, %arg11: memref<1x128xf32, #tpu.memory_space<vmem>>, %arg12: memref<1x128xf32, #tpu.memory_space<vmem>>, %arg13: memref<1x1xf32, #tpu.memory_space<vmem>>, %arg14: memref<2x1x3xf32, #tpu.memory_space<vmem>>) attributes {dimension_semantics = [#tpu.dimension_semantics<parallel>], iteration_bounds = array<i64: 1>, scalar_prefetch = 0 : i64, scratch_operands = 0 : i64, tpu.core_type = #tpu.core_type<tc>, window_params = [{transform_indices = @transform_0, window_bounds = array<i64: 2, 3, 128>}, {transform_indices = @transform_1, window_bounds = array<i64: 2, 8, 64>}, {transform_indices = @transform_2, window_bounds = array<i64: 2, 1, 8>}, {pipeline_mode = #tpu.pipeline_mode<synchronous>, transform_indices = @transform_3, window_bounds = array<i64: 64, 64>}, {pipeline_mode = #tpu.pipeline_mode<synchronous>, transform_indices = @transform_4, window_bounds = array<i64: 1, 64>}, {pipeline_mode = #tpu.pipeline_mode<synchronous>, transform_indices = @transform_5, window_bounds = array<i64: 128, 448>}, {pipeline_mode = #tpu.pipeline_mode<synchronous>, transform_indices = @transform_6, window_bounds = array<i64: 1, 448>}, {pipeline_mode = #tpu.pipeline_mode<synchronous>, transform_indices = @transform_7, window_bounds = array<i64: 64, 384>}, {pipeline_mode = #tpu.pipeline_mode<synchronous>, transform_indices = @transform_8, window_bounds = array<i64: 1, 384>}, {pipeline_mode = #tpu.pipeline_mode<synchronous>, transform_indices = @transform_9, window_bounds = array<i64: 128, 128>}, {pipeline_mode = #tpu.pipeline_mode<synchronous>, transform_indices = @transform_10, window_bounds = array<i64: 1, 128>}, {pipeline_mode = #tpu.pipeline_mode<synchronous>, transform_indices = @transform_11, window_bounds = array<i64: 1, 128>}, {pipeline_mode = #tpu.pipeline_mode<synchronous>, transform_indices = @transform_12, window_bounds = array<i64: 1, 1>}, {transform_indices = @transform_13, window_bounds = array<i64: 2, 1, 3>}]} {
    %c0 = arith.constant 0 : index
    %c0_0 = arith.constant 0 : index
    %c0_1 = arith.constant 0 : index
    %0 = vector.load %arg2[%c0, %c0_0, %c0_1] : memref<2x8x64xf32, #tpu.memory_space<vmem>>, vector<2x8x64xf32>
    %1 = arith.truncf %0 : vector<2x8x64xf32> to vector<2x8x64xbf16>
    %c0_2 = arith.constant 0 : index
    %c0_3 = arith.constant 0 : index
    %c0_4 = arith.constant 0 : index
    %2 = vector.load %arg1[%c0_2, %c0_3, %c0_4] : memref<2x3x128xf32, #tpu.memory_space<vmem>>, vector<2x3x128xf32>
    %3 = vector.shape_cast %2 : vector<2x3x128xf32> to vector<6x128xf32>
    %c0_5 = arith.constant 0 : index
    %c0_6 = arith.constant 0 : index
    %c0_7 = arith.constant 0 : index
    %4 = vector.load %arg3[%c0_5, %c0_6, %c0_7] : memref<2x1x8xf32, #tpu.memory_space<vmem>>, vector<2x1x8xf32>
    %cst = arith.constant 0.000000e+00 : f32
    %5 = vector.broadcast %cst : f32 to vector<2x1x8xf32>
    %6 = arith.cmpf oeq, %4, %5 : vector<2x1x8xf32>
    %cst_8 = arith.constant 0xFF800000 : f32
    %cst_9 = arith.constant 0.000000e+00 : f32
    %7 = vector.broadcast %cst_8 : f32 to vector<2x1x8xf32>
    %8 = vector.broadcast %cst_9 : f32 to vector<2x1x8xf32>
    %9 = arith.select %6, %7, %8 : vector<2x1x8xi1>, vector<2x1x8xf32>
    %10 = vector.shape_cast %1 : vector<2x8x64xbf16> to vector<16x64xbf16>
    %c0_10 = arith.constant 0 : index
    %c0_11 = arith.constant 0 : index
    %11 = vector.load %arg4[%c0_10, %c0_11] : memref<64x64xbf16, #tpu.memory_space<vmem>>, vector<64x64xbf16>
    %cst_12 = arith.constant dense<0.000000e+00> : vector<16x64xf32>
    %12 = tpu.matmul %10, %11, %cst_12 {dimension_numbers = #tpu.dot_dimension_numbers<[1], [0], [0], [1], [0, 0, 1, 1], [], []>} : vector<16x64xbf16>, vector<64x64xbf16>, vector<16x64xf32> -> vector<16x64xf32>
    %c0_13 = arith.constant 0 : index
    %c0_14 = arith.constant 0 : index
    %13 = vector.load %arg5[%c0_13, %c0_14] : memref<1x64xf32, #tpu.memory_space<vmem>>, vector<1x64xf32>
    %14 = vector.broadcast %13 : vector<1x64xf32> to vector<16x64xf32>
    %15 = arith.addf %12, %14 : vector<16x64xf32>
    %16 = vector.shape_cast %15 : vector<16x64xf32> to vector<2x8x64xf32>
    %17 = arith.mulf %16, %16 : vector<2x8x64xf32>
    %cst_15 = arith.constant dense<0.000000e+00> : vector<2x8xf32>
    %18 = vector.multi_reduction <add>, %17, %cst_15 [2] : vector<2x8x64xf32> to vector<2x8xf32>
    %19 = arith.truncf %16 : vector<2x8x64xf32> to vector<2x8x64xbf16>
    %c0_16 = arith.constant 0 : index
    %c0_17 = arith.constant 0 : index
    %20 = vector.load %arg6[%c0_16, %c0_17] : memref<128x448xbf16, #tpu.memory_space<vmem>>, vector<128x448xbf16>
    %c0_18 = arith.constant 0 : index
    %c0_19 = arith.constant 0 : index
    %21 = vector.load %arg8[%c0_18, %c0_19] : memref<64x384xbf16, #tpu.memory_space<vmem>>, vector<64x384xbf16>
    %c0_20 = arith.constant 0 : index
    %c0_21 = arith.constant 0 : index
    %22 = vector.load %arg10[%c0_20, %c0_21] : memref<128x128xbf16, #tpu.memory_space<vmem>>, vector<128x128xbf16>
    %c0_22 = arith.constant 0 : index
    %c0_23 = arith.constant 0 : index
    %23 = vector.load %arg7[%c0_22, %c0_23] : memref<1x448xf32, #tpu.memory_space<vmem>>, vector<1x448xf32>
    %c0_24 = arith.constant 0 : index
    %c0_25 = arith.constant 0 : index
    %24 = vector.load %arg9[%c0_24, %c0_25] : memref<1x384xf32, #tpu.memory_space<vmem>>, vector<1x384xf32>
    %25 = arith.truncf %3 : vector<6x128xf32> to vector<6x128xbf16>
    %cst_26 = arith.constant dense<0.000000e+00> : vector<6x448xf32>
    %26 = tpu.matmul %25, %20, %cst_26 {dimension_numbers = #tpu.dot_dimension_numbers<[1], [0], [0], [1], [0, 0, 1, 1], [], []>} : vector<6x128xbf16>, vector<128x448xbf16>, vector<6x448xf32> -> vector<6x448xf32>
    %27 = vector.broadcast %23 : vector<1x448xf32> to vector<6x448xf32>
    %28 = arith.addf %26, %27 : vector<6x448xf32>
    %29 = vector.extract_strided_slice %28 {offsets = [0, 0], sizes = [6, 384], strides = [1, 1]} : vector<6x448xf32> to vector<6x384xf32>
    %30 = vector.extract_strided_slice %28 {offsets = [0, 384], sizes = [6, 64], strides = [1, 1]} : vector<6x448xf32> to vector<6x64xf32>
    %31 = vector.shape_cast %30 : vector<6x64xf32> to vector<2x3x64xf32>
    %32 = arith.truncf %31 : vector<2x3x64xf32> to vector<2x3x64xbf16>
    %cst_27 = arith.constant dense<0.000000e+00> : vector<2x3x8xf32>
    %33 = tpu.matmul %32, %19, %cst_27 {dimension_numbers = #tpu.dot_dimension_numbers<[2], [2], [1], [1], [0, 0, 0, 1, 1, 1], [0], [0]>} : vector<2x3x64xbf16>, vector<2x8x64xbf16>, vector<2x3x8xf32> -> vector<2x3x8xf32>
    %34 = arith.mulf %31, %31 : vector<2x3x64xf32>
    %cst_28 = arith.constant dense<0.000000e+00> : vector<2x3xf32>
    %35 = vector.multi_reduction <add>, %34, %cst_28 [2] : vector<2x3x64xf32> to vector<2x3xf32>
    %36 = vector.shape_cast %18 : vector<2x8xf32> to vector<2x1x8xf32>
    %37 = vector.shape_cast %35 : vector<2x3xf32> to vector<2x3x1xf32>
    %38 = vector.broadcast %36 : vector<2x1x8xf32> to vector<2x3x8xf32>
    %39 = vector.broadcast %37 : vector<2x3x1xf32> to vector<2x3x8xf32>
    %40 = arith.mulf %38, %39 : vector<2x3x8xf32>
    %cst_29 = arith.constant 1.000000e-16 : f32
    %41 = vector.broadcast %cst_29 : f32 to vector<2x3x8xf32>
    %42 = arith.maximumf %40, %41 : vector<2x3x8xf32>
    %cst_30 = arith.constant 2.000000e+00 : f32
    %43 = vector.broadcast %cst_30 : f32 to vector<2x3x8xf32>
    %44 = arith.mulf %43, %33 : vector<2x3x8xf32>
    %45 = math.rsqrt %42 : vector<2x3x8xf32>
    %46 = arith.mulf %44, %45 : vector<2x3x8xf32>
    %47 = vector.broadcast %9 : vector<2x1x8xf32> to vector<2x3x8xf32>
    %48 = arith.addf %46, %47 : vector<2x3x8xf32>
    %cst_31 = arith.constant dense<0xFF800000> : vector<2x3xf32>
    %49 = vector.multi_reduction <maximumf>, %48, %cst_31 [2] : vector<2x3x8xf32> to vector<2x3xf32>
    %50 = vector.shape_cast %49 : vector<2x3xf32> to vector<2x3x1xf32>
    %51 = vector.broadcast %50 : vector<2x3x1xf32> to vector<2x3x8xf32>
    %52 = arith.subf %48, %51 : vector<2x3x8xf32>
    %53 = math.exp %52 : vector<2x3x8xf32>
    %cst_32 = arith.constant dense<0.000000e+00> : vector<2x3xf32>
    %54 = vector.multi_reduction <add>, %53, %cst_32 [2] : vector<2x3x8xf32> to vector<2x3xf32>
    %55 = vector.shape_cast %54 : vector<2x3xf32> to vector<2x3x1xf32>
    %56 = tpu.reciprocal %55 {approx = true} : vector<2x3x1xf32> -> vector<2x3x1xf32>
    %57 = vector.broadcast %56 : vector<2x3x1xf32> to vector<2x3x8xf32>
    %58 = arith.mulf %53, %57 : vector<2x3x8xf32>
    %59 = arith.truncf %58 : vector<2x3x8xf32> to vector<2x3x8xbf16>
    %cst_33 = arith.constant dense<0.000000e+00> : vector<2x3x64xf32>
    %60 = tpu.matmul %59, %1, %cst_33 {dimension_numbers = #tpu.dot_dimension_numbers<[2], [1], [1], [2], [0, 0, 0, 1, 1, 2], [0], [0]>} : vector<2x3x8xbf16>, vector<2x8x64xbf16>, vector<2x3x64xf32> -> vector<2x3x64xf32>
    %61 = vector.shape_cast %60 : vector<2x3x64xf32> to vector<6x64xf32>
    %62 = arith.truncf %61 : vector<6x64xf32> to vector<6x64xbf16>
    %cst_34 = arith.constant dense<0.000000e+00> : vector<6x384xf32>
    %63 = tpu.matmul %62, %21, %cst_34 {dimension_numbers = #tpu.dot_dimension_numbers<[1], [0], [0], [1], [0, 0, 1, 1], [], []>} : vector<6x64xbf16>, vector<64x384xbf16>, vector<6x384xf32> -> vector<6x384xf32>
    %64 = vector.broadcast %24 : vector<1x384xf32> to vector<6x384xf32>
    %65 = arith.addf %63, %64 : vector<6x384xf32>
    %66 = vector.extract_strided_slice %65 {offsets = [0, 0], sizes = [6, 128], strides = [1, 1]} : vector<6x384xf32> to vector<6x128xf32>
    %67 = vector.extract_strided_slice %29 {offsets = [0, 0], sizes = [6, 128], strides = [1, 1]} : vector<6x384xf32> to vector<6x128xf32>
    %68 = arith.addf %66, %67 : vector<6x128xf32>
    %69 = arith.negf %68 : vector<6x128xf32>
    %70 = math.exp %69 : vector<6x128xf32>
    %cst_35 = arith.constant 1.000000e+00 : f32
    %71 = vector.broadcast %cst_35 : f32 to vector<6x128xf32>
    %72 = arith.addf %71, %70 : vector<6x128xf32>
    %73 = arith.divf %71, %72 : vector<6x128xf32>
    %74 = vector.extract_strided_slice %65 {offsets = [0, 128], sizes = [6, 128], strides = [1, 1]} : vector<6x384xf32> to vector<6x128xf32>
    %75 = vector.extract_strided_slice %29 {offsets = [0, 128], sizes = [6, 128], strides = [1, 1]} : vector<6x384xf32> to vector<6x128xf32>
    %76 = arith.addf %74, %75 : vector<6x128xf32>
    %77 = arith.negf %76 : vector<6x128xf32>
    %78 = math.exp %77 : vector<6x128xf32>
    %cst_36 = arith.constant 1.000000e+00 : f32
    %79 = vector.broadcast %cst_36 : f32 to vector<6x128xf32>
    %80 = arith.addf %79, %78 : vector<6x128xf32>
    %81 = arith.divf %79, %80 : vector<6x128xf32>
    %82 = vector.extract_strided_slice %65 {offsets = [0, 256], sizes = [6, 128], strides = [1, 1]} : vector<6x384xf32> to vector<6x128xf32>
    %83 = vector.extract_strided_slice %29 {offsets = [0, 256], sizes = [6, 128], strides = [1, 1]} : vector<6x384xf32> to vector<6x128xf32>
    %84 = arith.mulf %73, %83 : vector<6x128xf32>
    %85 = arith.addf %82, %84 : vector<6x128xf32>
    %86 = math.tanh %85 : vector<6x128xf32>
    %cst_37 = arith.constant 1.000000e+00 : f32
    %87 = vector.broadcast %cst_37 : f32 to vector<6x128xf32>
    %88 = arith.subf %87, %81 : vector<6x128xf32>
    %89 = arith.mulf %88, %86 : vector<6x128xf32>
    %90 = arith.mulf %81, %3 : vector<6x128xf32>
    %91 = arith.addf %89, %90 : vector<6x128xf32>
    %92 = arith.truncf %91 : vector<6x128xf32> to vector<6x128xbf16>
    %cst_38 = arith.constant dense<0.000000e+00> : vector<6x448xf32>
    %93 = tpu.matmul %92, %20, %cst_38 {dimension_numbers = #tpu.dot_dimension_numbers<[1], [0], [0], [1], [0, 0, 1, 1], [], []>} : vector<6x128xbf16>, vector<128x448xbf16>, vector<6x448xf32> -> vector<6x448xf32>
    %94 = vector.broadcast %23 : vector<1x448xf32> to vector<6x448xf32>
    %95 = arith.addf %93, %94 : vector<6x448xf32>
    %96 = vector.extract_strided_slice %95 {offsets = [0, 0], sizes = [6, 384], strides = [1, 1]} : vector<6x448xf32> to vector<6x384xf32>
    %97 = vector.extract_strided_slice %95 {offsets = [0, 384], sizes = [6, 64], strides = [1, 1]} : vector<6x448xf32> to vector<6x64xf32>
    %98 = vector.shape_cast %97 : vector<6x64xf32> to vector<2x3x64xf32>
    %99 = arith.truncf %98 : vector<2x3x64xf32> to vector<2x3x64xbf16>
    %cst_39 = arith.constant dense<0.000000e+00> : vector<2x3x8xf32>
    %100 = tpu.matmul %99, %19, %cst_39 {dimension_numbers = #tpu.dot_dimension_numbers<[2], [2], [1], [1], [0, 0, 0, 1, 1, 1], [0], [0]>} : vector<2x3x64xbf16>, vector<2x8x64xbf16>, vector<2x3x8xf32> -> vector<2x3x8xf32>
    %101 = arith.mulf %98, %98 : vector<2x3x64xf32>
    %cst_40 = arith.constant dense<0.000000e+00> : vector<2x3xf32>
    %102 = vector.multi_reduction <add>, %101, %cst_40 [2] : vector<2x3x64xf32> to vector<2x3xf32>
    %103 = vector.shape_cast %18 : vector<2x8xf32> to vector<2x1x8xf32>
    %104 = vector.shape_cast %102 : vector<2x3xf32> to vector<2x3x1xf32>
    %105 = vector.broadcast %103 : vector<2x1x8xf32> to vector<2x3x8xf32>
    %106 = vector.broadcast %104 : vector<2x3x1xf32> to vector<2x3x8xf32>
    %107 = arith.mulf %105, %106 : vector<2x3x8xf32>
    %cst_41 = arith.constant 1.000000e-16 : f32
    %108 = vector.broadcast %cst_41 : f32 to vector<2x3x8xf32>
    %109 = arith.maximumf %107, %108 : vector<2x3x8xf32>
    %cst_42 = arith.constant 2.000000e+00 : f32
    %110 = vector.broadcast %cst_42 : f32 to vector<2x3x8xf32>
    %111 = arith.mulf %110, %100 : vector<2x3x8xf32>
    %112 = math.rsqrt %109 : vector<2x3x8xf32>
    %113 = arith.mulf %111, %112 : vector<2x3x8xf32>
    %114 = vector.broadcast %9 : vector<2x1x8xf32> to vector<2x3x8xf32>
    %115 = arith.addf %113, %114 : vector<2x3x8xf32>
    %cst_43 = arith.constant dense<0xFF800000> : vector<2x3xf32>
    %116 = vector.multi_reduction <maximumf>, %115, %cst_43 [2] : vector<2x3x8xf32> to vector<2x3xf32>
    %117 = vector.shape_cast %116 : vector<2x3xf32> to vector<2x3x1xf32>
    %118 = vector.broadcast %117 : vector<2x3x1xf32> to vector<2x3x8xf32>
    %119 = arith.subf %115, %118 : vector<2x3x8xf32>
    %120 = math.exp %119 : vector<2x3x8xf32>
    %cst_44 = arith.constant dense<0.000000e+00> : vector<2x3xf32>
    %121 = vector.multi_reduction <add>, %120, %cst_44 [2] : vector<2x3x8xf32> to vector<2x3xf32>
    %122 = vector.shape_cast %121 : vector<2x3xf32> to vector<2x3x1xf32>
    %123 = tpu.reciprocal %122 {approx = true} : vector<2x3x1xf32> -> vector<2x3x1xf32>
    %124 = vector.broadcast %123 : vector<2x3x1xf32> to vector<2x3x8xf32>
    %125 = arith.mulf %120, %124 : vector<2x3x8xf32>
    %126 = arith.truncf %125 : vector<2x3x8xf32> to vector<2x3x8xbf16>
    %cst_45 = arith.constant dense<0.000000e+00> : vector<2x3x64xf32>
    %127 = tpu.matmul %126, %1, %cst_45 {dimension_numbers = #tpu.dot_dimension_numbers<[2], [1], [1], [2], [0, 0, 0, 1, 1, 2], [0], [0]>} : vector<2x3x8xbf16>, vector<2x8x64xbf16>, vector<2x3x64xf32> -> vector<2x3x64xf32>
    %128 = vector.shape_cast %127 : vector<2x3x64xf32> to vector<6x64xf32>
    %129 = arith.truncf %128 : vector<6x64xf32> to vector<6x64xbf16>
    %cst_46 = arith.constant dense<0.000000e+00> : vector<6x384xf32>
    %130 = tpu.matmul %129, %21, %cst_46 {dimension_numbers = #tpu.dot_dimension_numbers<[1], [0], [0], [1], [0, 0, 1, 1], [], []>} : vector<6x64xbf16>, vector<64x384xbf16>, vector<6x384xf32> -> vector<6x384xf32>
    %131 = vector.broadcast %24 : vector<1x384xf32> to vector<6x384xf32>
    %132 = arith.addf %130, %131 : vector<6x384xf32>
    %133 = vector.extract_strided_slice %132 {offsets = [0, 0], sizes = [6, 128], strides = [1, 1]} : vector<6x384xf32> to vector<6x128xf32>
    %134 = vector.extract_strided_slice %96 {offsets = [0, 0], sizes = [6, 128], strides = [1, 1]} : vector<6x384xf32> to vector<6x128xf32>
    %135 = arith.addf %133, %134 : vector<6x128xf32>
    %136 = arith.negf %135 : vector<6x128xf32>
    %137 = math.exp %136 : vector<6x128xf32>
    %cst_47 = arith.constant 1.000000e+00 : f32
    %138 = vector.broadcast %cst_47 : f32 to vector<6x128xf32>
    %139 = arith.addf %138, %137 : vector<6x128xf32>
    %140 = arith.divf %138, %139 : vector<6x128xf32>
    %141 = vector.extract_strided_slice %132 {offsets = [0, 128], sizes = [6, 128], strides = [1, 1]} : vector<6x384xf32> to vector<6x128xf32>
    %142 = vector.extract_strided_slice %96 {offsets = [0, 128], sizes = [6, 128], strides = [1, 1]} : vector<6x384xf32> to vector<6x128xf32>
    %143 = arith.addf %141, %142 : vector<6x128xf32>
    %144 = arith.negf %143 : vector<6x128xf32>
    %145 = math.exp %144 : vector<6x128xf32>
    %cst_48 = arith.constant 1.000000e+00 : f32
    %146 = vector.broadcast %cst_48 : f32 to vector<6x128xf32>
    %147 = arith.addf %146, %145 : vector<6x128xf32>
    %148 = arith.divf %146, %147 : vector<6x128xf32>
    %149 = vector.extract_strided_slice %132 {offsets = [0, 256], sizes = [6, 128], strides = [1, 1]} : vector<6x384xf32> to vector<6x128xf32>
    %150 = vector.extract_strided_slice %96 {offsets = [0, 256], sizes = [6, 128], strides = [1, 1]} : vector<6x384xf32> to vector<6x128xf32>
    %151 = arith.mulf %140, %150 : vector<6x128xf32>
    %152 = arith.addf %149, %151 : vector<6x128xf32>
    %153 = math.tanh %152 : vector<6x128xf32>
    %cst_49 = arith.constant 1.000000e+00 : f32
    %154 = vector.broadcast %cst_49 : f32 to vector<6x128xf32>
    %155 = arith.subf %154, %148 : vector<6x128xf32>
    %156 = arith.mulf %155, %153 : vector<6x128xf32>
    %157 = arith.mulf %148, %91 : vector<6x128xf32>
    %158 = arith.addf %156, %157 : vector<6x128xf32>
    %159 = arith.truncf %158 : vector<6x128xf32> to vector<6x128xbf16>
    %cst_50 = arith.constant dense<0.000000e+00> : vector<6x128xf32>
    %160 = tpu.matmul %159, %22, %cst_50 {dimension_numbers = #tpu.dot_dimension_numbers<[1], [0], [0], [1], [0, 0, 1, 1], [], []>} : vector<6x128xbf16>, vector<128x128xbf16>, vector<6x128xf32> -> vector<6x128xf32>
    %c0_51 = arith.constant 0 : index
    %c0_52 = arith.constant 0 : index
    %161 = vector.load %arg11[%c0_51, %c0_52] : memref<1x128xf32, #tpu.memory_space<vmem>>, vector<1x128xf32>
    %162 = vector.broadcast %161 : vector<1x128xf32> to vector<6x128xf32>
    %163 = arith.addf %160, %162 : vector<6x128xf32>
    %cst_53 = arith.constant 0.000000e+00 : f32
    %164 = vector.broadcast %cst_53 : f32 to vector<6x128xf32>
    %165 = arith.maximumf %163, %164 : vector<6x128xf32>
    %166 = vector.shape_cast %165 : vector<6x128xf32> to vector<2x3x128xf32>
    %c0_54 = arith.constant 0 : index
    %c0_55 = arith.constant 0 : index
    %167 = vector.load %arg12[%c0_54, %c0_55] : memref<1x128xf32, #tpu.memory_space<vmem>>, vector<1x128xf32>
    %168 = vector.shape_cast %167 : vector<1x128xf32> to vector<1x1x128xf32>
    %169 = vector.broadcast %168 : vector<1x1x128xf32> to vector<2x3x128xf32>
    %170 = arith.mulf %166, %169 : vector<2x3x128xf32>
    %cst_56 = arith.constant dense<0.000000e+00> : vector<2x3xf32>
    %171 = vector.multi_reduction <add>, %170, %cst_56 [2] : vector<2x3x128xf32> to vector<2x3xf32>
    %c0_57 = arith.constant 0 : index
    %c0_58 = arith.constant 0 : index
    %172 = vector.load %arg13[%c0_57, %c0_58] : memref<1x1xf32, #tpu.memory_space<vmem>>, vector<1x1xf32>
    %173 = vector.broadcast %172 : vector<1x1xf32> to vector<2x3xf32>
    %174 = arith.addf %171, %173 : vector<2x3xf32>
    %cst_59 = arith.constant dense<0xFF800000> : vector<2xf32>
    %175 = vector.multi_reduction <maximumf>, %174, %cst_59 [1] : vector<2x3xf32> to vector<2xf32>
    %176 = vector.shape_cast %175 : vector<2xf32> to vector<2x1xf32>
    %177 = vector.broadcast %176 : vector<2x1xf32> to vector<2x3xf32>
    %178 = arith.subf %174, %177 : vector<2x3xf32>
    %179 = math.exp %178 : vector<2x3xf32>
    %cst_60 = arith.constant dense<0.000000e+00> : vector<2xf32>
    %180 = vector.multi_reduction <add>, %179, %cst_60 [1] : vector<2x3xf32> to vector<2xf32>
    %181 = vector.shape_cast %180 : vector<2xf32> to vector<2x1xf32>
    %182 = math.log %181 : vector<2x1xf32>
    %183 = arith.addf %176, %182 : vector<2x1xf32>
    %184 = vector.broadcast %183 : vector<2x1xf32> to vector<2x3xf32>
    %185 = arith.subf %174, %184 : vector<2x3xf32>
    %186 = vector.shape_cast %185 : vector<2x3xf32> to vector<2x1x3xf32>
    %c0_61 = arith.constant 0 : index
    %c0_62 = arith.constant 0 : index
    %c0_63 = arith.constant 0 : index
    %187 = vector.load %arg14[%c0_61, %c0_62, %c0_63] : memref<2x1x3xf32, #tpu.memory_space<vmem>>, vector<2x1x3xf32>
    tpu.vector_store %arg14[%c0_61, %c0_62, %c0_63], %186 {strides = array<i32>} : memref<2x1x3xf32, #tpu.memory_space<vmem>>, vector<2x1x3xf32>,
    return
  }
  func.func @transform_0(%arg0: i32) -> (i32, i32, i32) {
    %c0_i32 = arith.constant 0 : i32
    %c0_i32_0 = arith.constant 0 : i32
    %c0_i32_1 = arith.constant 0 : i32
    return %arg0, %c0_i32, %c0_i32_0 : i32, i32, i32
  }
  func.func @transform_1(%arg0: i32) -> (i32, i32, i32) {
    %c0_i32 = arith.constant 0 : i32
    %c0_i32_0 = arith.constant 0 : i32
    %c0_i32_1 = arith.constant 0 : i32
    return %arg0, %c0_i32, %c0_i32_0 : i32, i32, i32
  }
  func.func @transform_2(%arg0: i32) -> (i32, i32, i32) {
    %c0_i32 = arith.constant 0 : i32
    %c0_i32_0 = arith.constant 0 : i32
    %c0_i32_1 = arith.constant 0 : i32
    return %arg0, %c0_i32, %c0_i32_0 : i32, i32, i32
  }
  func.func @transform_3(%arg0: i32) -> (i32, i32) {
    %c0_i32 = arith.constant 0 : i32
    %c0_i32_0 = arith.constant 0 : i32
    %c0_i32_1 = arith.constant 0 : i32
    return %c0_i32, %c0_i32_0 : i32, i32
  }
  func.func @transform_4(%arg0: i32) -> (i32, i32) {
    %c0_i32 = arith.constant 0 : i32
    %c0_i32_0 = arith.constant 0 : i32
    %c0_i32_1 = arith.constant 0 : i32
    return %c0_i32, %c0_i32_0 : i32, i32
  }
  func.func @transform_5(%arg0: i32) -> (i32, i32) {
    %c0_i32 = arith.constant 0 : i32
    %c0_i32_0 = arith.constant 0 : i32
    %c0_i32_1 = arith.constant 0 : i32
    return %c0_i32, %c0_i32_0 : i32, i32
  }
  func.func @transform_6(%arg0: i32) -> (i32, i32) {
    %c0_i32 = arith.constant 0 : i32
    %c0_i32_0 = arith.constant 0 : i32
    %c0_i32_1 = arith.constant 0 : i32
    return %c0_i32, %c0_i32_0 : i32, i32
  }
  func.func @transform_7(%arg0: i32) -> (i32, i32) {
    %c0_i32 = arith.constant 0 : i32
    %c0_i32_0 = arith.constant 0 : i32
    %c0_i32_1 = arith.constant 0 : i32
    return %c0_i32, %c0_i32_0 : i32, i32
  }
  func.func @transform_8(%arg0: i32) -> (i32, i32) {
    %c0_i32 = arith.constant 0 : i32
    %c0_i32_0 = arith.constant 0 : i32
    %c0_i32_1 = arith.constant 0 : i32
    return %c0_i32, %c0_i32_0 : i32, i32
  }
  func.func @transform_9(%arg0: i32) -> (i32, i32) {
    %c0_i32 = arith.constant 0 : i32
    %c0_i32_0 = arith.constant 0 : i32
    %c0_i32_1 = arith.constant 0 : i32
    return %c0_i32, %c0_i32_0 : i32, i32
  }
  func.func @transform_10(%arg0: i32) -> (i32, i32) {
    %c0_i32 = arith.constant 0 : i32
    %c0_i32_0 = arith.constant 0 : i32
    %c0_i32_1 = arith.constant 0 : i32
    return %c0_i32, %c0_i32_0 : i32, i32
  }
  func.func @transform_11(%arg0: i32) -> (i32, i32) {
    %c0_i32 = arith.constant 0 : i32
    %c0_i32_0 = arith.constant 0 : i32
    %c0_i32_1 = arith.constant 0 : i32
    return %c0_i32, %c0_i32_0 : i32, i32
  }
  func.func @transform_12(%arg0: i32) -> (i32, i32) {
    %c0_i32 = arith.constant 0 : i32
    %c0_i32_0 = arith.constant 0 : i32
    %c0_i32_1 = arith.constant 0 : i32
    return %c0_i32, %c0_i32_0 : i32, i32
  }
  func.func @transform_13(%arg0: i32) -> (i32, i32, i32) {
    %c0_i32 = arith.constant 0 : i32
    %c0_i32_0 = arith.constant 0 : i32
    %c0_i32_1 = arith.constant 0 : i32
    return %arg0, %c0_i32, %c0_i32_0 : i32, i32, i32
  }
}

</mosaic_0001>

<bundles_post_ra>
// kernel: tpu_custom_call.1
= control target key start
LH: loop header
LB: loop body
LE: loop exit
PB: predicated region body
PF: predicated region fallthrough
CT: control target
= control target key end

     0   :  { %s3708_s0 = inlined_call_operand.vmem [shape: f32[2,3,128], index: 0, kind: input, shape index: {}]   ;;  %s3709_s1 = inlined_call_operand.vmem [shape: f32[2,8,64], index: 1, kind: input, shape index: {}]   ;;  %s3710_s2 = inlined_call_operand.vmem [shape: f32[2,1,8], index: 2, kind: input, shape index: {}]   ;;  %s3711_s3 = inlined_call_operand.vmem [shape: bf16[64,64], index: 3, kind: input, shape index: {}]   ;;  %s3712_s4 = inlined_call_operand.vmem [shape: f32[1,64], index: 4, kind: input, shape index: {}]   ;;  %s3713_s5 = inlined_call_operand.vmem [shape: bf16[128,448], index: 5, kind: input, shape index: {}]   ;;  %s3714_s6 = inlined_call_operand.vmem [shape: f32[1,448], index: 6, kind: input, shape index: {}]   ;;  %s3715_s7 = inlined_call_operand.vmem [shape: bf16[64,384], index: 7, kind: input, shape index: {}]   ;;  %s3716_s8 = inlined_call_operand.vmem [shape: f32[1,384], index: 8, kind: input, shape index: {}]   ;;  %s3717_s9 = inlined_call_operand.vmem [shape: bf16[128,128], index: 9, kind: input, shape index: {}]   ;;  %s3718_s10 = inlined_call_operand.vmem [shape: f32[1,128], index: 10, kind: input, shape index: {}]   ;;  %s3719_s11 = inlined_call_operand.vmem [shape: f32[1,128], index: 11, kind: input, shape index: {}]   ;;  %s3720_s12 = inlined_call_operand.<no memory space> [shape: f32[1,1], index: 12, kind: input, shape index: {}]   ;;  %s3721_s13 = inlined_call_operand.hbm [shape: f32[2,1,3], index: 13, kind: output, shape index: {}]  }
   0x1   :  { %v18_v0 = vstv %s3720_s12 }
   0x2   :  { %19 = vst [vmem:[#allocation2] sm:$0x1] %v18_v0 }
   0x3   :  { %v2983_v1 = vld [vmem:[%s3713_s5 + $0xc] ss:$16 sps:$4 sm:$0xff]   ;;  %v2988_v2 = vld [vmem:[%s3713_s5 + $0x8] ss:$16 sps:$4 sm:$0xff]   ;;  %v3725_v3 = vmov 0.0   ;;  %v3722_v4 = vmov 0   ;;  %v3724_v9 = vlaneseq }
   0x4   :  { %2605 = vmatprep.subr.bf16.mxu1 %v3725_v3  ;;  %569 = vmatprep.mubr.bf16.mxu0 %v3722_v4  ;;  %v2996_v5 = vld [vmem:[%s3713_s5 + $0x2c] ss:$16 sps:$4 sm:$0xff]   ;;  %v3003_v6 = vld [vmem:[%s3713_s5 + $0x28] ss:$16 sps:$4 sm:$0xff]   ;;  %v2902_v7 = vmov 1966171168  }
   0x5   :  { %537 = vmatprep.subr.bf16.mxu0 %v2983_v1  ;;  %2733 = vset.pattern.permute.xlu1 %v3722_v4  ;;  %v65_v8 = vunpack.c.l.s4 %v2902_v7  ;;  %v3010_v10 = vld [vmem:[%s3713_s5 + $0x4c] ss:$16 sps:$4 sm:$0xff]   ;;  %vm2903_vm0 = vmmov 0   ;;  %v3018_v11 = vld [vmem:[%s3713_s5 + $0x48] ss:$16 sps:$4 sm:$0xff]   ;;  %v3026_v14 = vshrl.u32 %v3724_v9, 7 }
   0x6   :  { %538 = vmatpush1.bf16.msra.mxu0 %v2988_v2  ;;  %2732 = vset.pattern.permute.xlu0 %v3722_v4  ;;  %v3023_v12 = vld [vmem:[%s3713_s5 + $0x6c] ss:$16 sps:$4 sm:$0xff]   ;;  %v2752_v15 = vld [vmem:[%s3711_s3] sm:$0xff]   ;;  %v3035_v16 = vld [vmem:[%s3713_s5 + $0x68] ss:$16 sps:$4 sm:$0xff]   ;;  %vm152_vm1 = vcmask 523264  }
   0x7   :  { %539 = vmatprep.subr.bf16.mxu0 %v2996_v5  ;;  %2613 = vmatprep.mubr.msk.bf16.mxu1 %vm2903_vm0, %v3725_v3  ;;  %v66_v13 = vunpack.c.0.s8 %v65_v8  ;;  %v2756_v17 = vld [vmem:[%s3711_s3 + $0x8] sm:$0xff]   ;;  %v2760_v20 = vld [vmem:[%s3711_s3 + $0x10] sm:$0xff]   ;;  %v2484_v21 = vld.sshfl [vmem:[%s3708_s0] sm:$0x13 pattern:$0x75316420] }
   0x8   :  { %2606 = vmatpush3.bf16.msra.mxu1 %v2752_v15  ;;  %v3049_v19 = vld [vmem:[%s3713_s5 + $0x8c] ss:$16 sps:$4 sm:$0xff]   ;;  %v3061_v22 = vld [vmem:[%s3713_s5 + $0x88] ss:$16 sps:$4 sm:$0xff]   ;;  %v63_v24 = vcombine.high %v2484_v21, %v2484_v21  ;;  %v3088_v35 = vld [vmem:[%s3709_s1] sm:$0xff] }
   0x9   :  { %2607 = vmatprep.subr.bf16.mxu1 %v3725_v3  ;;  %v3043_v18 = vsub.s32 %v66_v13, %v3026_v14  ;;  %v2485_v23 = vld.sshfl [vmem:[%s3708_s0 + $0x4] sm:$0x13 pattern:$0x75316420]  ;;  %v3072_v26 = vld [vmem:[%s3713_s5 + $0xac] ss:$16 sps:$4 sm:$0xff]  }
   0xa   :  { %540 = vmatpush1.bf16.msra.mxu0 %v3003_v6  ;;  %v86_v27 = vcombine.high %v2485_v23, %v2485_v23  ;;  %v3078_v29 = vld [vmem:[%s3713_s5 + $0xa8] ss:$16 sps:$4 sm:$0xff]   ;;  %v3100_v39 = vld [vmem:[%s3713_s5 + $0x4] ss:$16 sps:$4 sm:$0xff]   ;;  %v3106_v40 = vld [vmem:[%s3713_s5 + $0xcc] ss:$16 sps:$4 sm:$0xff]  }
   0xb   :  { %541 = vmatprep.subr.bf16.mxu0 %v3010_v10  ;;  %v70_v25 = vrot.slane %v2484_v21, %v3043_v18  ;;  %v93_v28 = vrot.slane %v2485_v23, %v3043_v18  ;;  %v77_v30 = vrot.slane %v63_v24, %v3043_v18  ;;  %v2761_v32 = vld [vmem:[%s3711_s3 + $0x18] sm:$0xff]   ;;  %v3093_v36 = vld [vmem:[%s3709_s1 + $0x8] sm:$0xff]  ;;  %v3121_v47 = vld [vmem:[%s3713_s5] ss:$16 sps:$4 sm:$0xff]  }
   0xc   :  { %2608 = vmatpush3.bf16.msra.mxu1 %v2756_v17  ;;  %v100_v33 = vrot.slane %v86_v27, %v3043_v18  ;;  %v2564_v44 = vpack.c.bf16 %v3093_v36, %v3088_v35  ;;  %v3115_v45 = vld [vmem:[%s3713_s5 + $0xc8] ss:$16 sps:$4 sm:$0xff]   ;;  %v3128_v49 = vld [vmem:[%s3713_s5 + $0x24] ss:$16 sps:$4 sm:$0xff]   ;;  %v3134_v50 = vld [vmem:[%s3713_s5 + $0xec] ss:$16 sps:$4 sm:$0xff]  }
   0xd   :  { %2609 = vmatprep.subr.bf16.mxu1 %v3725_v3  ;;  %v78_v31 = vcombine.high %v70_v25, %v70_v25  ;;  %v101_v34 = vcombine.high %v93_v28, %v93_v28  ;;  %v273_v37 = vcombine.low %v70_v25, %v77_v30  ;;  %v3140_v52 = vld [vmem:[%s3713_s5 + $0xe8] ss:$16 sps:$4 sm:$0xff]   ;;  %v3147_v54 = vld [vmem:[%s3713_s5 + $0x20] ss:$16 sps:$4 sm:$0xff]   ;;  %v3152_v55 = vld [vmem:[%s3713_s5 + $0x44] ss:$16 sps:$4 sm:$0xff]  }
   0xe   :  { %542 = vmatpush1.bf16.msra.mxu0 %v3018_v11  ;;  %v3164_v57 = vld [vmem:[%s3713_s5 + $0x40] ss:$16 sps:$4 sm:$0xff]   ;;  %v3169_v58 = vld [vmem:[%s3713_s5 + $0x64] ss:$16 sps:$4 sm:$0xff]  }
   0xf   :  { %543 = vmatprep.subr.bf16.mxu0 %v3023_v12  ;;  %v274_v38 = vcombine.low %v78_v31, %v93_v28  ;;  %v275_v41 = vcombine.low %v100_v33, %v101_v34  ;;  %v282_v42 = vrot.slane %v273_v37, %v3043_v18  ;;  %v3179_v60 = vld [vmem:[%s3713_s5 + $0x60] ss:$16 sps:$4 sm:$0xff]   ;;  %v3185_v61 = vld [vmem:[%s3713_s5 + $0x84] ss:$16 sps:$4 sm:$0xff]  }
  0x10   :  { %2610 = vmatpush3.bf16.msra.mxu1 %v2760_v20 }
  0x11   :  { %2611 = vmatprep.subr.bf16.mxu1 %v3725_v3  ;;  %v289_v43 = vrot.slane %v274_v38, %v3043_v18  ;;  %v296_v46 = vrot.slane %v275_v41, %v3043_v18 }
  0x12   :  { %544 = vmatpush1.bf16.msra.mxu0 %v3035_v16 }
  0x13   :  { %545 = vmatprep.subr.bf16.mxu0 %v3049_v19  ;;  %v297_v48 = vcombine.low %v282_v42, %v289_v43  ;;  %v311_v51 = vrot.slane %v296_v46, %v3043_v18 }
  0x14   :  { %2612 = vmatpush3.bf16.msra.mxu1 %v2761_v32 }
  0x15   :  { %496 = vmatprep.subr.bf16.mxu1 %v3100_v39  ;;  %v304_v53 = vrot.slane %v297_v48, %v3043_v18 }
  0x16   :  { %546 = vmatpush1.bf16.msra.mxu0 %v3061_v22 }
  0x17   :  { %547 = vmatprep.subr.bf16.mxu0 %v3072_v26  ;;  %2614 = vmatmul.mubr.msk.bf16.vlgmr.msra.gmra.mrb[0].mxu1 %vm152_vm1, %v2564_v44  ;;  %v3157_v56 = vcombine.low %v304_v53, %v311_v51 }
  0x18   :  { %497 = vmatpush1.bf16.msra.mxu1 %v3121_v47  ;;  %528 = vmatprep.mubr.bf16.mxu1 %v3722_v4 }
  0x19   :  { %3742 = vst [vmem:[#allocation6_spill] sm:$0xff] %v3157_v56  ;;  %498 = vmatprep.subr.bf16.mxu1 %v3128_v49  ;;  %v314_v59 = vpack.c.bf16 %v3157_v56, %v3157_v56 }
  0x1a   :  { %548 = vmatpush1.bf16.msra.mxu0 %v3078_v29 }
  0x1b   :  { %549 = vmatprep.subr.bf16.mxu0 %v3106_v40 }
  0x1c   :  { %499 = vmatpush1.bf16.msra.mxu1 %v3147_v54 }
  0x1d   :  { %500 = vmatprep.subr.bf16.mxu1 %v3152_v55 }
  0x1e   :  { %550 = vmatpush1.bf16.msra.mxu0 %v3115_v45 }
  0x1f   :  { %551 = vmatprep.subr.bf16.mxu0 %v3134_v50 }
  0x20   :  { %501 = vmatpush1.bf16.msra.mxu1 %v3164_v57 }
  0x21   :  { %502 = vmatprep.subr.bf16.mxu1 %v3169_v58 }
  0x22   :  { %552 = vmatpush1.bf16.msra.mxu0 %v3140_v52 }
  0x23   :  { %2629 = vmatprep.subr.bf16.mxu0 %v3725_v3 }
  0x25   :  { %570 = vmatmul.mubr.bf16.vlgmr.msra.gmra.mrb[0].mxu0 %v314_v59 }
  0x26   :  { %2631 = vmatprep.mubr.msk.bf16.mxu0 %vm2903_vm0, %v3725_v3 }
  0x27   :  { %20 = vsyncpa [#allocation4], 0  ;;  %503 = vmatpush1.bf16.msra.mxu1 %v3179_v60  ;;  %v3195_v62 = vld [vmem:[%s3713_s5 + $0x80] ss:$16 sps:$4 sm:$0xff]   ;;  %v3201_v63 = vld [vmem:[%s3713_s5 + $0xa4] ss:$16 sps:$4 sm:$0xff]  }
  0x28   :  { %504 = vmatprep.subr.bf16.mxu1 %v3185_v61  ;;  %v3207_v0 = vld [vmem:[%s3713_s5 + $0xa0] ss:$16 sps:$4 sm:$0xff]   ;;  %v3213_v7 = vld [vmem:[%s3713_s5 + $0xc4] ss:$16 sps:$4 sm:$0xff]   ;;  %v330_v25 = vsub.s32 3, %v3026_v14  ;;  %vm834_vm2 = vcmask 518144  }
  0x29   :  { %v3219_v8 = vld [vmem:[%s3713_s5 + $0xc0] ss:$16 sps:$4 sm:$0xff]   ;;  %v3226_v13 = vld [vmem:[%s3713_s5 + $0xe4] ss:$16 sps:$4 sm:$0xff]   ;;  %vm943_vm4 = vcmask 1041409   ;;  %vm945_vm5 = vcmask 1042434  }
  0x2a   :  { %v3231_v15 = vld [vmem:[%s3713_s5 + $0xe0] ss:$16 sps:$4 sm:$0xff]   ;;  %vm967_vm6 = vcmask 59392   ;;  %vm996_vm8 = vcmask 1043456   ;;  %vm992_vm9 = vcmask 64512   ;;  %vm2358_vm10 = vcmask 1042432  }
  0x2b   :  { %505 = vmatpush1.bf16.msra.mxu1 %v3195_v62  ;;  %v2486_v17 = vld [vmem:[%s3712_s4] ss:$0 sm:$0xff]  ;;  %vm2389_vm11 = vcmask 17408   ;;  %vm2465_vm12 = vcmask 16384  }
  0x2c   :  { %506 = vmatprep.subr.bf16.mxu1 %v3201_v63  ;;  %v3245_v30 = vld [vmem:[%s3714_s6] sm:$0xf] }
  0x2d   :  { %v3252_v32 = vrot.slane %v3245_v30, %v330_v25 }
  0x2f   :  { %507 = vmatpush1.bf16.msra.mxu1 %v3207_v0  ;;  %3744 = vst [vmem:[#allocation8_spill] sm:$0xff] %v3252_v32 }
  0x30   :  { %508 = vmatprep.subr.bf16.mxu1 %v3213_v7 }
  0x33   :  { %509 = vmatpush1.bf16.msra.mxu1 %v3219_v8 }
  0x34   :  { %510 = vmatprep.subr.bf16.mxu1 %v3226_v13 }
  0x37   :  { %511 = vmatpush1.bf16.msra.mxu1 %v3231_v15 }
  0x38   :  { %2617 = vmatprep.subr.bf16.mxu1 %v3725_v3 }
  0x3a   :  { %529 = vmatmul.mubr.bf16.vlgmr.msra.gmra.mrb[4].mxu1 %v314_v59 }
  0x3b   :  { %2619 = vmatprep.mubr.msk.bf16.mxu1 %vm2903_vm0, %v3725_v3 }
  0xea   :  { %v190_v20 = vpop.f32.mrb[0].mxu1 }
  0xeb   :  { %v191_v21 = vadd.f32 %v2486_v17, %v190_v20  ;;  %v2615_v23 = vpop.f32.mrb[1].mxu1 }
  0xec   :  { %v193_v24 = vpop.f32.mrb[2].mxu1 }
  0xed   :  { %v205_v27 = vpack.c.bf16 %v191_v21, %v191_v21  ;;  %v2616_v28 = vpop.f32.mrb[3].mxu1 }
  0xee   :  { %v194_v28 = vadd.f32 %v2486_v17, %v193_v24 }
  0xef   :  { %v3248_v31 = vsel %vm152_vm1, %v205_v27, 0 }
  0xf0   :  { %3743 = vst [vmem:[#allocation7_spill] sm:$0xff] %v3248_v31  ;;  %2618 = vmatpush3.bf16.xpose.msra.mxu1 %v3248_v31  ;;  %v206_v31 = vpack.c.bf16 %v194_v28, %v194_v28 }
  0xf1   :  { %2623 = vmatprep.subr.bf16.mxu1 %v3725_v3 }
  0xf8   :  { %v3255_v33 = vpop.f32.mrb[0].mxu0 }
  0xf9   :  { %v573_v34 = vpop.f32.mrb[1].mxu0 }
  0xfa   :  { %v574_v37 = vadd.f32 %v573_v34, %v3252_v32  ;;  %v575_v38 = vpop.f32.mrb[2].mxu0 }
  0xfb   :  { %v576_v41 = vpop.f32.mrb[3].mxu0 }
  0xfc   :  { %v579_v42 = vcombine.high %v574_v37, %v574_v37  ;;  %v586_v43 = vrot.slane %v574_v37, %v3043_v18 }
  0xfe   :  { %v593_v44 = vrot.slane %v579_v42, %v3043_v18  ;;  %v594_v46 = vcombine.high %v586_v43, %v586_v43  ;;  %v602_v48 = vrot.slane %v586_v43, %v3043_v18 }
 0x100   :  { %v595_v51 = vcombine.high %v593_v44, %v593_v44  ;;  %v609_v53 = vrot.slane %v593_v44, %v3043_v18  ;;  %v616_v59 = vrot.slane %v594_v46, %v3043_v18  ;;  %v624_v20 = vcombine.high %v602_v48, %v602_v48 }
 0x101   :  { %v774_v38 = vmul.f32 %v602_v48, %v602_v48 }
 0x102   :  { %v623_v23 = vrot.slane %v595_v51, %v3043_v18  ;;  %v625_v25 = vcombine.high %v616_v59, %v616_v59  ;;  %v632_v27 = vcombine.low %v602_v48, %v616_v59  ;;  %v646_v34 = vrot.slane %v624_v20, %v3043_v18 }
 0x103   :  { %v775_v37 = vmul.f32 %v616_v59, %v616_v59  ;;  %v776_v41 = vmul.f32 %v624_v20, %v624_v20  ;;  %v778_v43 = vmul.f32 %v609_v53, %v609_v53 }
 0x104   :  { %v639_v42 = vrot.slane %v632_v27, %v3043_v18  ;;  %v655_v4 = vcombine.low %v625_v25, %v609_v53  ;;  %v777_v9 = vmul.f32 %v625_v25, %v625_v25  ;;  %v779_v44 = vmul.f32 %v623_v23, %v623_v23 }
 0x105   :  { %v786_v3 = vcombine.low %v774_v38, %v775_v37  ;;  %v800_v17 = vrot.slane %v776_v41, %v3043_v18  ;;  %v669_v24 = vrot.slane %v623_v23, %v3043_v18  ;;  %v3745_v38 = vmov 0.0  }
 0x106   :  { %v647_v32 = vcombine.low %v639_v42, %v646_v34  ;;  %v662_v46 = vrot.slane %v655_v4, %v3043_v18  ;;  %v809_v51 = vcombine.low %v777_v9, %v778_v43  ;;  %v823_v53 = vrot.slane %v779_v44, %v3043_v18 }
 0x107   :  { %v793_v56 = vrot.slane %v786_v3, %v3043_v18  ;;  %v3274_v4 = vsel %vm152_vm1, %v206_v31, 0  ;;  %v197_v34 = vmul.f32 %v191_v21, %v191_v21  ;;  %v198_v31 = vmul.f32 %v194_v28, %v194_v28 }
 0x108   :  { %v654_v48 = vrot.slane %v647_v32, %v3043_v18  ;;  %v816_v59 = vrot.slane %v809_v51, %v3043_v18  ;;  %v670_v25 = vcombine.low %v662_v46, %v669_v24  ;;  %v3292_v43 = vsub.s32 0, %v3026_v14 }
 0x109   :  { %v801_v20 = vcombine.low %v793_v56, %v800_v17  ;;  %v199_v21 = vsel %vm152_vm1, %v197_v34, 0.0  ;;  %v202_v41 = vsel %vm152_vm1, %v198_v31, 0.0  ;;  %v3295_v28 = vsub.s32 1, %v3026_v14 }
 0x10a   :  { %v680_v27 = vpack.c.bf16 %v654_v48, %v654_v48  ;;  %v824_v9 = vcombine.low %v816_v59, %v823_v53  ;;  %v677_v37 = vrot.slane %v670_v25, %v3043_v18  ;;  %v3298_v51 = vsub.s32 2, %v3026_v14 }
 0x10b   :  { %v808_v3 = vrot.slane %v801_v20, %v3043_v18 }
 0x10c   :  { %2620 = vmatmul.mubr.msk.bf16.vlgmr.msra.gmra.mrb[8].mxu1 %vm152_vm1, %v680_v27  ;;  %v831_v23 = vrot.slane %v824_v9, %v3043_v18  ;;  %v681_v42 = vpack.c.bf16 %v677_v37, %v677_v37 }
 0x10d   :  { %v835_v32 = vsel %vm834_vm2, %v808_v3, 0.0  ;;  %2624 = vmatpush3.bf16.xpose.msra.mxu1 %v3274_v4  ;;  %2625 = vmatprep.mubr.msk.bf16.mxu1 %vm2903_vm0, %v3745_v38 }
 0x10e   :  { %836 = vadd.xlane.f32.xlu0 %v835_v32  ;;  %v838_v56 = vsel %vm834_vm2, %v831_v23, 0.0  ;;  %2635 = vmatprep.subr.bf16.mxu1 %v3745_v38 }
 0x10f   :  { %839 = vadd.xlane.f32.xlu1 %v838_v56 }
 0x112   :  { %200 = vadd.xlane.f32.xlu0 %v199_v21 }
 0x113   :  { %203 = vadd.xlane.f32.xlu1 %v202_v41 }
 0x114   :  { %2626 = vmatmul.mubr.msk.bf16.vlgmr.msra.gmra.mrb[12].mxu1 %vm152_vm1, %v681_v42 }
 0x115   :  { %2637 = vmatprep.mubr.msk.bf16.mxu1 %vm2903_vm0, %v3745_v38 }
 0x19b   :  { %v837_v44 = vpop.xlane.xlu0 %836 }
 0x19c   :  { %v840_v46 = vpop.xlane.xlu1 %839  ;;  %v846_v17 = vrot.slane %v837_v44, %v3292_v43  ;;  %v850_v24 = vrot.slane %v837_v44, %v3295_v28  ;;  %v854_v48 = vrot.slane %v837_v44, %v3298_v51 }
 0x19d   :  { %v858_v34 = vrot.slane %v840_v46, %v3292_v43  ;;  %v862_v56 = vrot.slane %v840_v46, %v3295_v28  ;;  %v866_v21 = vrot.slane %v840_v46, %v3298_v51 }
 0x19f   :  { %v3303_v59 = vpop.xlane.xlu0 %200 }
 0x1a0   :  { %v873_v53 = vmul.f32 %v846_v17, %v3303_v59  ;;  %v874_v20 = vmul.f32 %v850_v24, %v3303_v59  ;;  %v875_v25 = vmul.f32 %v854_v48, %v3303_v59  ;;  %v3308_v3 = vpop.xlane.xlu1 %203 }
 0x1a1   :  { %v876_v32 = vmul.f32 %v858_v34, %v3308_v3  ;;  %v877_v31 = vmul.f32 %v862_v56, %v3308_v3  ;;  %v878_v41 = vmul.f32 %v866_v21, %v3308_v3 }
 0x1a2   :  { %v879_v27 = vmax.f32 %v873_v53, 1e-16  ;;  %v880_v9 = vmax.f32 %v874_v20, 1e-16  ;;  %v881_v23 = vmax.f32 %v875_v25, 1e-16 }
 0x1a3   :  { %v882_v37 = vmax.f32 %v876_v32, 1e-16  ;;  %v883_v42 = vmax.f32 %v877_v31, 1e-16  ;;  %v884_v24 = vmax.f32 %v878_v41, 1e-16 }
 0x1a4   :  { %2810 = vrsqrt.f32 %v879_v27  ;;  %v102_v41 = vld [vmem:[%s3710_s2] sm:$0x1] }
 0x1a5   :  { %2812 = vrsqrt.f32 %v880_v9  ;;  %vm104_vm3 = vcmp.eq.f32.partialorder %v102_v41, 0.0 }
 0x1a6   :  { %2814 = vrsqrt.f32 %v881_v23 }
 0x1a7   :  { %2816 = vrsqrt.f32 %v882_v37  ;;  %v3746_v37 = vlaneseq }
 0x1a8   :  { %2818 = vrsqrt.f32 %v883_v42 }
 0x1a9   :  { %2820 = vrsqrt.f32 %v884_v24  ;;  %v918_v21 = vand.u32 127, %v3746_v37 }
 0x1ab   :  { %v3321_v42 = vsub.s32 %v918_v21, %v3026_v14 }
 0x1ae   :  { %v2811_v44 = vpop.eup %2810 }
 0x1af   :  { %v2813_v17 = vpop.eup %2812  ;;  %900 = vperm.xlu0 %2732, %v2811_v44  }
 0x1b0   :  { %903 = vperm.xlu1 %2733, %v2813_v17   ;;  %v2815_v48 = vpop.eup %2814 }
 0x1b1   :  { %v2817_v53 = vpop.eup %2816 }
 0x1b2   :  { %v2819_v20 = vpop.eup %2818 }
 0x1b3   :  { %v2821_v25 = vpop.eup %2820 }
 0x1b4   :  { %906 = vperm.xlu1 %2733, %v2815_v48  }
 0x1b8   :  { %909 = vperm.xlu1 %2733, %v2817_v53   ;;  %v106_v53 = vsel %vm104_vm3, -inf, %v3745_v38 }
 0x1b9   :  { %v3329_v14 = vrot.slane %v106_v53, %v3292_v43 }
 0x1bb   :  { %3747 = vst [vmem:[#allocation9_spill] sm:$0xff] %v3329_v14 }
 0x1bc   :  { %912 = vperm.xlu1 %2733, %v2819_v20  }
 0x1c0   :  { %915 = vperm.xlu1 %2733, %v2821_v25  }
 0x1df   :  { %v722_v46 = vpop.f32.mrb[8].mxu1 }
 0x1e0   :  { %v2621_v27 = vpop.f32.mrb[9].mxu1 }
 0x1e1   :  { %v725_v9 = vpop.f32.mrb[10].mxu1  ;;  %v885_v27 = vmul.f32 2.0, %v722_v46 }
 0x1e2   :  { %v2622_v34 = vpop.f32.mrb[11].mxu1 }
 0x1e7   :  { %v768_v23 = vpop.f32.mrb[12].mxu1 }
 0x1e8   :  { %v2627_v32 = vpop.f32.mrb[13].mxu1  ;;  %v886_v53 = vmul.f32 2.0, %v768_v23 }
 0x1e9   :  { %v771_v56 = vpop.f32.mrb[14].mxu1 }
 0x1ea   :  { %v2628_v31 = vpop.f32.mrb[15].mxu1 }
 0x1eb   :  { %v103_v31 = vld [vmem:[%s3710_s2 + $0x1] sm:$0x1] }
 0x1ec   :  { %vm105_vm7 = vcmp.eq.f32.partialorder %v103_v31, 0.0 }
 0x22e   :  { %v901_v44 = vpop.permute.xlu0 %900 }
 0x22f   :  { %v904_v17 = vpop.permute.xlu1 %903  ;;  %v922_v24 = vrot.slane %v901_v44, %v3321_v42  ;;  %v107_v44 = vsel %vm105_vm7, -inf, %v3745_v38 }
 0x230   :  { %v926_v48 = vrot.slane %v904_v17, %v3321_v42 }
 0x232   :  { %v944_v9 = vsel %vm943_vm4, %v926_v48, %v922_v24 }
 0x233   :  { %v907_v20 = vpop.permute.xlu1 %906 }
 0x234   :  { %v930_v25 = vrot.slane %v907_v20, %v3321_v42 }
 0x236   :  { %v946_v34 = vsel %vm945_vm5, %v930_v25, %v944_v9  ;;  %v3343_v25 = vrot.slane %v107_v44, %v3292_v43 }
 0x237   :  { %v910_v32 = vpop.permute.xlu1 %909  ;;  %v951_v56 = vmul.f32 %v946_v34, %v885_v27 }
 0x238   :  { %v934_v17 = vrot.slane %v910_v32, %v3321_v42 }
 0x239   :  { %v965_v37 = vadd.f32 %v3329_v14, %v951_v56 }
 0x23b   :  { %v913_v21 = vpop.permute.xlu1 %912  ;;  %v968_v41 = vsel %vm967_vm6, %v965_v37, -inf }
 0x23c   :  { %969 = vmax.xlane.f32.xlu1 %v968_v41  ;;  %v938_v46 = vrot.slane %v913_v21, %v3321_v42 }
 0x23e   :  { %v947_v20 = vsel %vm943_vm4, %v938_v46, %v934_v17 }
 0x23f   :  { %v916_v24 = vpop.permute.xlu1 %915 }
 0x240   :  { %v942_v48 = vrot.slane %v916_v24, %v3321_v42 }
 0x242   :  { %v948_v27 = vsel %vm945_vm5, %v942_v48, %v947_v20  ;;  %v50_v48 = vpack.c.bf16 %v3088_v35, %v3088_v35 }
 0x243   :  { %v952_v9 = vmul.f32 %v948_v27, %v886_v53 }
 0x244   :  { %v3352_v53 = vsel %vm996_vm8, %v50_v48, 0  ;;  %v3412_v48 = vld [vmem:[%s3715_s7 + $0x30] ss:$12 sps:$4 sm:$0xff]  }
 0x245   :  { %v966_v34 = vadd.f32 %v3343_v25, %v952_v9  ;;  %2630 = vmatpush3.bf16.msra.mxu0 %v3352_v53  ;;  %3755 = vst [vmem:[#allocation16_spill] sm:$0xff] %v3412_v48 }
 0x246   :  { %2641 = vmatprep.subr.bf16.mxu0 %v3745_v38 }
 0x247   :  { %v971_v56 = vsel %vm967_vm6, %v966_v34, -inf }
 0x248   :  { %972 = vmax.xlane.f32.xlu0 %v971_v56 }
 0x2c9   :  { %v970_v31 = vpop.xlane.xlu1 %969 }
 0x2ca   :  { %v974_v21 = vsub.f32 %v965_v37, %v970_v31  ;;  %v51_v37 = vpack.c.bf16 %v3093_v36, %v3093_v36 }
 0x2cc   :  { %v976_v32 = vmul.f32 1.442695, %v974_v21  ;;  %v3358_v20 = vsel %vm996_vm8, %v51_v37, 0  ;;  %v3748_v21 = vmov 0   ;;  %v3417_v37 = vld [vmem:[%s3715_s7 + $0x38] ss:$12 sps:$4 sm:$0xff]  }
 0x2cd   :  { %2636 = vmatpush3.bf16.msra.mxu1 %v3358_v20  ;;  %3756 = vst [vmem:[#allocation17_spill] sm:$0xff] %v3417_v37 }
 0x2ce   :  { %2822 = vpow2.f32 %v976_v32  ;;  %v3369_v32 = vld [vmem:[%s3715_s7 + $0x4] ss:$12 sps:$4 sm:$0xff]  }
 0x2cf   :  { %1259 = vmatprep.subr.bf16.mxu1 %v3369_v32 }
 0x2d5   :  { %v973_v41 = vpop.xlane.xlu0 %972 }
 0x2d6   :  { %v975_v24 = vsub.f32 %v966_v34, %v973_v41  ;;  %v3374_v41 = vld [vmem:[%s3715_s7] ss:$12 sps:$4 sm:$0xff]  }
 0x2d7   :  { %3749 = vst [vmem:[#allocation10_spill] sm:$0xff] %v3374_v41 }
 0x2d8   :  { %v2823_v23 = vpop.eup %2822  ;;  %v978_v14 = vmul.f32 1.442695, %v975_v24  ;;  %v3379_v24 = vld [vmem:[%s3715_s7 + $0x8] ss:$12 sps:$4 sm:$0xff]  }
 0x2d9   :  { %v980_v46 = vsel %vm967_vm6, %v2823_v23, 0.0  ;;  %3750 = vst [vmem:[#allocation11_spill] sm:$0xff] %v3379_v24 }
 0x2da   :  { %2824 = vpow2.f32 %v978_v14  ;;  %981 = vadd.xlane.f32.xlu1 %v980_v46  ;;  %v3393_v46 = vld [vmem:[%s3715_s7 + $0x18] ss:$12 sps:$4 sm:$0xff]  }
 0x2db   :  { %3752 = vst [vmem:[#allocation13_spill] sm:$0xff] %v3393_v46 }
 0x2e4   :  { %v2825_v44 = vpop.eup %2824 }
 0x2e5   :  { %v983_v17 = vsel %vm967_vm6, %v2825_v44, 0.0 }
 0x2e6   :  { %984 = vadd.xlane.f32.xlu1 %v983_v17  ;;  %v3406_v17 = vld [vmem:[%s3715_s7 + $0x34] ss:$12 sps:$4 sm:$0xff]  }
 0x2e7   :  { %3754 = vst [vmem:[#allocation15_spill] sm:$0xff] %v3406_v17 }
 0x367   :  { %v982_v14 = vpop.xlane.xlu1 %981 }
 0x368   :  { %2826 = vrcp.f32 %v982_v14  ;;  %v3423_v14 = vld [vmem:[%s3715_s7 + $0x4c] ss:$12 sps:$4 sm:$0xff]  }
 0x369   :  { %3757 = vst [vmem:[#allocation18_spill] sm:$0xff] %v3423_v14 }
 0x372   :  { %v2827_v27 = vpop.eup %2826 }
 0x373   :  { %v988_v9 = vmul.f32 %v2827_v27, %v2823_v23  ;;  %v985_v34 = vpop.xlane.xlu1 %984  ;;  %v3387_v23 = vld [vmem:[%s3715_s7 + $0x1c] ss:$12 sps:$4 sm:$0xff]  }
 0x374   :  { %2828 = vrcp.f32 %v985_v34  ;;  %3751 = vst [vmem:[#allocation12_spill] sm:$0xff] %v3387_v23  ;;  %v3430_v27 = vld [vmem:[%s3715_s7 + $0x48] ss:$12 sps:$4 sm:$0xff]  }
 0x375   :  { %v990_v35 = vpack.c.bf16 %v988_v9, %v988_v9  ;;  %3758 = vst [vmem:[#allocation19_spill] sm:$0xff] %v3430_v27  ;;  %v3435_v9 = vld [vmem:[%s3715_s7 + $0x50] ss:$12 sps:$4 sm:$0xff]  }
 0x376   :  { %3759 = vst [vmem:[#allocation20_spill] sm:$0xff] %v3435_v9 }
 0x377   :  { %2632 = vmatmul.mubr.msk.bf16.vlgmr.msra.gmra.mrb[4].mxu0 %vm992_vm9, %v990_v35 }
 0x378   :  { %2649 = vmatprep.mubr.msk.bf16.mxu0 %vm2903_vm0, %v3745_v38  ;;  %2642 = vmatpush3.bf16.msra.mxu0 %v3379_v24 }
 0x379   :  { %2643 = vmatprep.subr.bf16.mxu0 %v3745_v38 }
 0x37e   :  { %v2829_v56 = vpop.eup %2828 }
 0x37f   :  { %v989_v31 = vmul.f32 %v2829_v56, %v2825_v44  ;;  %v3398_v44 = vld [vmem:[%s3715_s7 + $0x20] ss:$12 sps:$4 sm:$0xff]  }
 0x380   :  { %3753 = vst [vmem:[#allocation14_spill] sm:$0xff] %v3398_v44  ;;  %2644 = vmatpush3.bf16.msra.mxu0 %v3398_v44 }
 0x381   :  { %v991_v36 = vpack.c.bf16 %v989_v31, %v989_v31  ;;  %2645 = vmatprep.subr.bf16.mxu0 %v3745_v38 }
 0x383   :  { %2638 = vmatmul.mubr.msk.bf16.vlgmr.msra.gmra.mrb[16].mxu1 %vm992_vm9, %v991_v36 }
 0x384   :  { %1291 = vmatprep.mubr.bf16.mxu1 %v3748_v21  ;;  %1260 = vmatpush1.bf16.msra.mxu1 %v3374_v41 }
 0x385   :  { %1261 = vmatprep.subr.bf16.mxu1 %v3387_v23  ;;  %2646 = vmatpush3.bf16.msra.mxu0 %v3417_v37 }
 0x386   :  { %2647 = vmatprep.subr.bf16.mxu0 %v3745_v38 }
 0x388   :  { %1262 = vmatpush1.bf16.msra.mxu1 %v3393_v46 }
 0x389   :  { %1263 = vmatprep.subr.bf16.mxu1 %v3406_v17  ;;  %2648 = vmatpush3.bf16.msra.mxu0 %v3435_v9 }
 0x38a   :  { %1362 = vmatprep.subr.bf16.mxu0 %v3100_v39 }
 0x38c   :  { %1264 = vmatpush1.bf16.msra.mxu1 %v3412_v48 }
 0x38d   :  { %1265 = vmatprep.subr.bf16.mxu1 %v3423_v14 }
 0x390   :  { %1266 = vmatpush1.bf16.msra.mxu1 %v3430_v27 }
 0x391   :  { %1403 = vmatprep.subr.bf16.mxu1 %v2983_v1 }
 0x44a   :  { %v1034_v34 = vpop.f32.mrb[4].mxu0 }
 0x44b   :  { %v2633_v35 = vpop.f32.mrb[5].mxu0  ;;  %v1094_v31 = vrot.slane %v1034_v34, %v3043_v18 }
 0x44c   :  { %v1037_v56 = vpop.f32.mrb[6].mxu0 }
 0x44d   :  { %v2634_v36 = vpop.f32.mrb[7].mxu0  ;;  %v1095_v37 = vcombine.high %v1094_v31, %v1094_v31  ;;  %v1102_v44 = vrot.slane %v1094_v31, %v3043_v18 }
 0x44f   :  { %v1109_v14 = vrot.slane %v1095_v37, %v3043_v18  ;;  %v1110_v24 = vcombine.high %v1102_v44, %v1102_v44 }
 0x451   :  { %v1134_v39 = vcombine.low %v1102_v44, %v1109_v14 }
 0x453   :  { %v1143_v23 = vrot.slane %v1134_v39, %v3043_v18 }
 0x456   :  { %v1080_v48 = vpop.f32.mrb[16].mxu1 }
 0x457   :  { %v1117_v27 = vrot.slane %v1080_v48, %v3043_v18  ;;  %v2639_v17 = vpop.f32.mrb[17].mxu1 }
 0x458   :  { %v1083_v9 = vpop.f32.mrb[18].mxu1 }
 0x459   :  { %v1118_v46 = vcombine.high %v1117_v27, %v1117_v27  ;;  %v1125_v1 = vrot.slane %v1117_v27, %v3043_v18  ;;  %v2640_v35 = vpop.f32.mrb[19].mxu1 }
 0x45b   :  { %v1132_v56 = vrot.slane %v1118_v46, %v3043_v18  ;;  %v1133_v34 = vcombine.high %v1125_v1, %v1125_v1  ;;  %v1135_v36 = vcombine.low %v1110_v24, %v1125_v1 }
 0x45d   :  { %v1136_v31 = vcombine.low %v1132_v56, %v1133_v34  ;;  %v1150_v37 = vrot.slane %v1135_v36, %v3043_v18  ;;  %v3762_v34 = vld [vmem:[#allocation8_spill] sm:$0xff] }
 0x45f   :  { %v1157_v41 = vrot.slane %v1136_v31, %v3043_v18  ;;  %v1158_v48 = vcombine.low %v1143_v23, %v1150_v37 }
 0x461   :  { %v1165_v17 = vrot.slane %v1158_v48, %v3043_v18  ;;  %v1172_v44 = vrot.slane %v1157_v41, %v3043_v18 }
 0x463   :  { %v1173_v14 = vcombine.low %v1165_v17, %v1172_v44 }
 0x465   :  { %v1175_v9 = vpack.c.bf16 %v1173_v14, %v1173_v14 }
 0x467   :  { %2541 = vmatmul.mubr.msk.bf16.vlgmr.msra.gmra.mrb[4].mxu1 %vm152_vm1, %v1175_v9  ;;  %2650 = vmatmul.mubr.msk.bf16.vlgmr.msra.gmra.mrb[8].mxu0 %vm152_vm1, %v1175_v9 }
 0x468   :  { %1363 = vmatpush1.bf16.msra.mxu0 %v3121_v47  ;;  %1404 = vmatpush1.bf16.msra.mxu1 %v2988_v2  ;;  %v272_v2 = vld [vmem:[%s3716_s8] sm:$0x7] }
 0x469   :  { %1364 = vmatprep.subr.bf16.mxu0 %v3128_v49  ;;  %1405 = vmatprep.subr.bf16.mxu1 %v2996_v5  ;;  %v319_v5 = vrot.slane %v3245_v30, %v3292_v43 }
 0x46a   :  { %1394 = vmatprep.mubr.bf16.mxu0 %v3748_v21  ;;  %1435 = vmatprep.mubr.bf16.mxu1 %v3748_v21 }
 0x46c   :  { %1365 = vmatpush1.bf16.msra.mxu0 %v3147_v54  ;;  %1406 = vmatpush1.bf16.msra.mxu1 %v3003_v6  ;;  %v1180_v6 = vrot.slane %v272_v2, %v3292_v43 }
 0x46d   :  { %1366 = vmatprep.subr.bf16.mxu0 %v3152_v55  ;;  %1407 = vmatprep.subr.bf16.mxu1 %v3010_v10  ;;  %v323_v10 = vrot.slane %v3245_v30, %v3295_v28 }
 0x470   :  { %1367 = vmatpush1.bf16.msra.mxu0 %v3164_v57  ;;  %1408 = vmatpush1.bf16.msra.mxu1 %v3018_v11  ;;  %v1184_v11 = vrot.slane %v272_v2, %v3295_v28 }
 0x471   :  { %1368 = vmatprep.subr.bf16.mxu0 %v3169_v58  ;;  %1409 = vmatprep.subr.bf16.mxu1 %v3023_v12  ;;  %v3499_v12 = vadd.f32 %v1180_v6, %v319_v5 }
 0x474   :  { %1369 = vmatpush1.bf16.msra.mxu0 %v3179_v60  ;;  %1410 = vmatpush1.bf16.msra.mxu1 %v3035_v16 }
 0x475   :  { %1370 = vmatprep.subr.bf16.mxu0 %v3185_v61  ;;  %1411 = vmatprep.subr.bf16.mxu1 %v3049_v19  ;;  %v3507_v61 = vrot.slane %v3245_v30, %v3298_v51  ;;  %v3760_v30 = vld [vmem:[#allocation6_spill] sm:$0xff] }
 0x478   :  { %1371 = vmatpush1.bf16.msra.mxu0 %v3195_v62  ;;  %1412 = vmatpush1.bf16.msra.mxu1 %v3061_v22  ;;  %v3501_v22 = vadd.f32 %v1184_v11, %v323_v10  ;;  %v3510_v62 = vrot.slane %v272_v2, %v3298_v51 }
 0x479   :  { %1372 = vmatprep.subr.bf16.mxu0 %v3201_v63  ;;  %1413 = vmatprep.subr.bf16.mxu1 %v3072_v26 }
 0x47c   :  { %1373 = vmatpush1.bf16.msra.mxu0 %v3207_v0  ;;  %1414 = vmatpush1.bf16.msra.mxu1 %v3078_v29  ;;  %v572_v0 = vadd.f32 %v3255_v33, %v3507_v61  ;;  %v3761_v33 = vld [vmem:[#allocation7_spill] sm:$0xff] }
 0x47d   :  { %1374 = vmatprep.subr.bf16.mxu0 %v3213_v7  ;;  %1415 = vmatprep.subr.bf16.mxu1 %v3106_v40 }
 0x480   :  { %1375 = vmatpush1.bf16.msra.mxu0 %v3219_v8  ;;  %1416 = vmatpush1.bf16.msra.mxu1 %v3115_v45 }
 0x481   :  { %1376 = vmatprep.subr.bf16.mxu0 %v3226_v13  ;;  %1417 = vmatprep.subr.bf16.mxu1 %v3134_v50 }
 0x484   :  { %1377 = vmatpush1.bf16.msra.mxu0 %v3231_v15  ;;  %1418 = vmatpush1.bf16.msra.mxu1 %v3140_v52 }
 0x485   :  { %2653 = vmatprep.subr.bf16.mxu0 %v3745_v38  ;;  %2659 = vmatprep.subr.bf16.mxu1 %v3745_v38 }
 0x53a   :  { %v1293_v16 = vpop.f32.mrb[4].mxu1  ;;  %v1334_v19 = vpop.f32.mrb[8].mxu0 }
 0x53b   :  { %v2710_v26 = vadd.f32 %v3499_v12, %v1293_v16  ;;  %v1295_v29 = vpop.f32.mrb[5].mxu1  ;;  %v2651_v40 = vpop.f32.mrb[9].mxu0  ;;  %v1335_v8 = vadd.f32 %v1334_v19, %v3510_v62 }
 0x53c   :  { %v1297_v45 = vpop.f32.mrb[6].mxu1  ;;  %v1337_v47 = vpop.f32.mrb[10].mxu0  ;;  %v2712_v54 = vadd.f32 %v3501_v22, %v1295_v29 }
 0x53d   :  { %v2543_v49 = vmul.f32 -1.442695, %v2710_v26  ;;  %v1298_v50 = vpop.f32.mrb[7].mxu1  ;;  %v2652_v52 = vpop.f32.mrb[11].mxu0 }
 0x53e   :  { %v2544_v55 = vmul.f32 -1.442695, %v2712_v54 }
 0x53f   :  { %2830 = vpow2.f32 %v2543_v49 }
 0x540   :  { %2832 = vpow2.f32 %v2544_v55 }
 0x549   :  { %v2831_v57 = vpop.eup %2830 }
 0x54a   :  { %v1344_v58 = vadd.f32 1.0, %v2831_v57  ;;  %v2833_v60 = vpop.eup %2832 }
 0x54b   :  { %v1351_v63 = vadd.f32 1.0, %v2833_v60 }
 0x54c   :  { %2834 = vrcp.f32 %v1344_v58 }
 0x54d   :  { %2836 = vrcp.f32 %v1351_v63 }
 0x556   :  { %v2835_v7 = vpop.eup %2834 }
 0x557   :  { %v1354_v13 = vmul.f32 %v2835_v7, %v572_v0  ;;  %v2837_v41 = vpop.eup %2836 }
 0x558   :  { %v1357_v24 = vsub.f32 1.0, %v2837_v41  ;;  %v1359_v27 = vmul.f32 %v2837_v41, %v3760_v30 }
 0x559   :  { %v1355_v15 = vadd.f32 %v1354_v13, %v1335_v8 }
 0x55b   :  { %2838 = vtanh.f32 %v1355_v15 }
 0x565   :  { %v2839_v23 = vpop.eup %2838 }
 0x566   :  { %v1358_v46 = vmul.f32 %v2839_v23, %v1357_v24 }
 0x568   :  { %v3516_v39 = vadd.f32 %v1359_v27, %v1358_v46 }
 0x56a   :  { %v1361_v1 = vpack.c.bf16 %v3516_v39, %v3516_v39 }
 0x56c   :  { %1395 = vmatmul.mubr.bf16.vlgmr.msra.gmra.mrb[12].mxu0 %v1361_v1  ;;  %1436 = vmatmul.mubr.bf16.vlgmr.msra.gmra.mrb[20].mxu1 %v1361_v1 }
 0x56d   :  { %2654 = vmatpush3.bf16.xpose.msra.mxu0 %v3761_v33  ;;  %2660 = vmatpush3.bf16.xpose.msra.mxu1 %v3274_v4 }
 0x56e   :  { %2655 = vmatprep.mubr.msk.bf16.mxu0 %vm2903_vm0, %v3745_v38  ;;  %2661 = vmatprep.mubr.msk.bf16.mxu1 %vm2903_vm0, %v3745_v38 }
 0x56f   :  { %2665 = vmatprep.subr.bf16.mxu0 %v3745_v38  ;;  %2671 = vmatprep.subr.bf16.mxu1 %v3745_v38 }
 0x63f   :  { %v3528_v35 = vpop.f32.mrb[20].mxu1 }
 0x640   :  { %v1439_v56 = vpop.f32.mrb[21].mxu1 }
 0x641   :  { %v1440_v36 = vadd.f32 %v1439_v56, %v3762_v34  ;;  %v1441_v31 = vpop.f32.mrb[22].mxu1 }
 0x642   :  { %v1442_v37 = vpop.f32.mrb[23].mxu1 }
 0x643   :  { %v1445_v48 = vcombine.high %v1440_v36, %v1440_v36  ;;  %v1452_v4 = vrot.slane %v1440_v36, %v3043_v18 }
 0x645   :  { %v1459_v17 = vrot.slane %v1445_v48, %v3043_v18  ;;  %v1460_v44 = vcombine.high %v1452_v4, %v1452_v4  ;;  %v1468_v14 = vrot.slane %v1452_v4, %v3043_v18 }
 0x647   :  { %v1461_v9 = vcombine.high %v1459_v17, %v1459_v17  ;;  %v1475_v2 = vrot.slane %v1459_v17, %v3043_v18  ;;  %v1482_v5 = vrot.slane %v1460_v44, %v3043_v18  ;;  %v1490_v6 = vcombine.high %v1468_v14, %v1468_v14 }
 0x648   :  { %v1634_v26 = vmul.f32 %v1468_v14, %v1468_v14 }
 0x649   :  { %v1489_v10 = vrot.slane %v1461_v9, %v3043_v18  ;;  %v1491_v11 = vcombine.high %v1482_v5, %v1482_v5  ;;  %v1498_v16 = vcombine.low %v1468_v14, %v1482_v5  ;;  %v1512_v19 = vrot.slane %v1490_v6, %v3043_v18 }
 0x64a   :  { %v1635_v29 = vmul.f32 %v1482_v5, %v1482_v5  ;;  %v1636_v40 = vmul.f32 %v1490_v6, %v1490_v6  ;;  %v1638_v49 = vmul.f32 %v1475_v2, %v1475_v2 }
 0x64b   :  { %v1505_v45 = vrot.slane %v1498_v16, %v3043_v18  ;;  %v1521_v47 = vcombine.low %v1491_v11, %v1475_v2  ;;  %v1637_v50 = vmul.f32 %v1491_v11, %v1491_v11  ;;  %v1639_v54 = vmul.f32 %v1489_v10, %v1489_v10 }
 0x64c   :  { %v1646_v52 = vcombine.low %v1634_v26, %v1635_v29  ;;  %v1535_v58 = vrot.slane %v1489_v10, %v3043_v18  ;;  %v1660_v0 = vrot.slane %v1636_v40, %v3043_v18 }
 0x64d   :  { %v1513_v55 = vcombine.low %v1505_v45, %v1512_v19  ;;  %v1528_v57 = vrot.slane %v1521_v47, %v3043_v18  ;;  %v1669_v60 = vcombine.low %v1637_v50, %v1638_v49  ;;  %v1683_v15 = vrot.slane %v1639_v54, %v3043_v18 }
 0x64e   :  { %v1653_v63 = vrot.slane %v1646_v52, %v3043_v18 }
 0x64f   :  { %v1536_v7 = vcombine.low %v1528_v57, %v1535_v58  ;;  %v1520_v8 = vrot.slane %v1513_v55, %v3043_v18  ;;  %v1676_v13 = vrot.slane %v1669_v60, %v3043_v18 }
 0x650   :  { %v1661_v41 = vcombine.low %v1653_v63, %v1660_v0 }
 0x651   :  { %v1546_v24 = vpack.c.bf16 %v1520_v8, %v1520_v8  ;;  %v1543_v23 = vrot.slane %v1536_v7, %v3043_v18  ;;  %v1684_v46 = vcombine.low %v1676_v13, %v1683_v15 }
 0x652   :  { %v1668_v30 = vrot.slane %v1661_v41, %v3043_v18 }
 0x653   :  { %2656 = vmatmul.mubr.msk.bf16.vlgmr.msra.gmra.mrb[16].mxu0 %vm152_vm1, %v1546_v24  ;;  %v1547_v27 = vpack.c.bf16 %v1543_v23, %v1543_v23  ;;  %v1691_v1 = vrot.slane %v1684_v46, %v3043_v18 }
 0x654   :  { %v1694_v33 = vsel %vm834_vm2, %v1668_v30, 0.0  ;;  %2666 = vmatpush3.bf16.msra.mxu0 %v3352_v53  ;;  %2667 = vmatprep.mubr.msk.bf16.mxu0 %vm2903_vm0, %v3745_v38 }
 0x655   :  { %1695 = vadd.xlane.f32.xlu0 %v1694_v33  ;;  %2662 = vmatmul.mubr.msk.bf16.vlgmr.msra.gmra.mrb[24].mxu1 %vm152_vm1, %v1547_v27  ;;  %v1697_v56 = vsel %vm834_vm2, %v1691_v1, 0.0 }
 0x656   :  { %1698 = vadd.xlane.f32.xlu1 %v1697_v56  ;;  %2672 = vmatpush3.bf16.msra.mxu1 %v3358_v20  ;;  %v3763_v56 = vld [vmem:[#allocation9_spill] sm:$0xff] }
 0x657   :  { %2673 = vmatprep.mubr.msk.bf16.mxu1 %vm2903_vm0, %v3745_v38  ;;  %2013 = vmatprep.subr.bf16.mxu0 %v3369_v32 }
 0x658   :  { %2677 = vmatprep.subr.bf16.mxu1 %v3745_v38 }
 0x6e2   :  { %v1696_v34 = vpop.xlane.xlu0 %1695 }
 0x6e3   :  { %v1705_v53 = vrot.slane %v1696_v34, %v3292_v43  ;;  %v1709_v36 = vrot.slane %v1696_v34, %v3295_v28  ;;  %v1713_v31 = vrot.slane %v1696_v34, %v3298_v51  ;;  %v1699_v37 = vpop.xlane.xlu1 %1698 }
 0x6e4   :  { %v1717_v48 = vrot.slane %v1699_v37, %v3292_v43  ;;  %v1725_v17 = vrot.slane %v1699_v37, %v3298_v51  ;;  %v1721_v44 = vrot.slane %v1699_v37, %v3295_v28 }
 0x6e5   :  { %v1732_v4 = vmul.f32 %v1705_v53, %v3303_v59  ;;  %v1733_v20 = vmul.f32 %v1709_v36, %v3303_v59  ;;  %v1734_v32 = vmul.f32 %v1713_v31, %v3303_v59 }
 0x6e6   :  { %v1735_v14 = vmul.f32 %v1717_v48, %v3308_v3  ;;  %v1737_v5 = vmul.f32 %v1725_v17, %v3308_v3  ;;  %v1736_v11 = vmul.f32 %v1721_v44, %v3308_v3 }
 0x6e7   :  { %v1738_v9 = vmax.f32 %v1732_v4, 1e-16  ;;  %v1739_v2 = vmax.f32 %v1733_v20, 1e-16  ;;  %v1740_v10 = vmax.f32 %v1734_v32, 1e-16 }
 0x6e8   :  { %v1741_v6 = vmax.f32 %v1735_v14, 1e-16  ;;  %v1743_v16 = vmax.f32 %v1737_v5, 1e-16  ;;  %v1742_v51 = vmax.f32 %v1736_v11, 1e-16 }
 0x6e9   :  { %2840 = vrsqrt.f32 %v1738_v9 }
 0x6ea   :  { %2842 = vrsqrt.f32 %v1739_v2 }
 0x6eb   :  { %2844 = vrsqrt.f32 %v1741_v6 }
 0x6ec   :  { %2846 = vrsqrt.f32 %v1740_v10 }
 0x6ed   :  { %2848 = vrsqrt.f32 %v1743_v16 }
 0x6ee   :  { %2850 = vrsqrt.f32 %v1742_v51 }
 0x6f3   :  { %v2841_v59 = vpop.eup %2840 }
 0x6f4   :  { %v2843_v19 = vpop.eup %2842  ;;  %1759 = vperm.xlu0 %2732, %v2841_v59  }
 0x6f5   :  { %1762 = vperm.xlu1 %2733, %v2843_v19   ;;  %v2845_v26 = vpop.eup %2844 }
 0x6f6   :  { %v2847_v29 = vpop.eup %2846 }
 0x6f7   :  { %v2849_v40 = vpop.eup %2848 }
 0x6f8   :  { %1768 = vperm.xlu0 %2732, %v2845_v26   ;;  %v2851_v45 = vpop.eup %2850 }
 0x6f9   :  { %1765 = vperm.xlu1 %2733, %v2847_v29  }
 0x6fc   :  { %1774 = vperm.xlu0 %2732, %v2849_v40   ;;  %v3764_v40 = vld [vmem:[#allocation10_spill] sm:$0xff] }
 0x6fd   :  { %1771 = vperm.xlu1 %2733, %v2851_v45   ;;  %v3765_v45 = vld [vmem:[#allocation12_spill] sm:$0xff] }
 0x726   :  { %v1585_v47 = vpop.f32.mrb[16].mxu0 }
 0x727   :  { %v2657_v3 = vpop.f32.mrb[17].mxu0  ;;  %v1744_v15 = vmul.f32 2.0, %v1585_v47 }
 0x728   :  { %v1588_v49 = vpop.f32.mrb[18].mxu0  ;;  %v1628_v50 = vpop.f32.mrb[24].mxu1  ;;  %v3766_v3 = vld [vmem:[#allocation13_spill] sm:$0xff] }
 0x729   :  { %v2658_v52 = vpop.f32.mrb[19].mxu0  ;;  %v2663_v54 = vpop.f32.mrb[25].mxu1  ;;  %v1745_v53 = vmul.f32 2.0, %v1628_v50  ;;  %v3767_v49 = vld [vmem:[#allocation11_spill] sm:$0xff] }
 0x72a   :  { %v1631_v55 = vpop.f32.mrb[26].mxu1  ;;  %v3768_v50 = vld [vmem:[#allocation15_spill] sm:$0xff]  ;;  %v3769_v52 = vld [vmem:[#allocation16_spill] sm:$0xff]  ;;  %v3770_v54 = vld [vmem:[#allocation14_spill] sm:$0xff] }
 0x72b   :  { %v2664_v57 = vpop.f32.mrb[27].mxu1  ;;  %v3772_v55 = vld [vmem:[#allocation19_spill] sm:$0xff] }
 0x72c   :  { %v3773_v57 = vld [vmem:[#allocation17_spill] sm:$0xff] }
 0x773   :  { %v1760_v58 = vpop.permute.xlu0 %1759 }
 0x774   :  { %v1763_v60 = vpop.permute.xlu1 %1762  ;;  %v1779_v63 = vrot.slane %v1760_v58, %v3321_v42  ;;  %v3774_v58 = vld [vmem:[#allocation20_spill] sm:$0xff] }
 0x775   :  { %v1783_v0 = vrot.slane %v1763_v60, %v3321_v42 }
 0x777   :  { %v1769_v7 = vpop.permute.xlu0 %1768  ;;  %v1800_v41 = vsel %vm943_vm4, %v1783_v0, %v1779_v63 }
 0x778   :  { %v1766_v8 = vpop.permute.xlu1 %1765  ;;  %v1791_v1 = vrot.slane %v1769_v7, %v3321_v42 }
 0x779   :  { %v1787_v13 = vrot.slane %v1766_v8, %v3321_v42 }
 0x77b   :  { %v1801_v24 = vsel %vm945_vm5, %v1787_v13, %v1800_v41  ;;  %v1775_v23 = vpop.permute.xlu0 %1774 }
 0x77c   :  { %v1799_v46 = vrot.slane %v1775_v23, %v3321_v42  ;;  %v1772_v30 = vpop.permute.xlu1 %1771  ;;  %v1806_v27 = vmul.f32 %v1801_v24, %v1744_v15 }
 0x77d   :  { %v1795_v33 = vrot.slane %v1772_v30, %v3321_v42 }
 0x77e   :  { %v1808_v34 = vadd.f32 %v1806_v27, %v3763_v56 }
 0x77f   :  { %v1802_v36 = vsel %vm943_vm4, %v1795_v33, %v1791_v1 }
 0x780   :  { %v1810_v31 = vsel %vm967_vm6, %v1808_v34, -inf  ;;  %v1803_v37 = vsel %vm945_vm5, %v1799_v46, %v1802_v36 }
 0x781   :  { %1811 = vmax.xlane.f32.xlu1 %v1810_v31  ;;  %v1807_v48 = vmul.f32 %v1803_v37, %v1745_v53 }
 0x783   :  { %v1809_v4 = vadd.f32 %v1807_v48, %v3343_v25 }
 0x785   :  { %v1813_v20 = vsel %vm967_vm6, %v1809_v4, -inf }
 0x786   :  { %1814 = vmax.xlane.f32.xlu0 %v1813_v20 }
 0x80e   :  { %v1812_v17 = vpop.xlane.xlu1 %1811 }
 0x80f   :  { %v1816_v32 = vsub.f32 %v1808_v34, %v1812_v17 }
 0x811   :  { %v1818_v44 = vmul.f32 1.442695, %v1816_v32 }
 0x813   :  { %2852 = vpow2.f32 %v1818_v44  ;;  %v1815_v14 = vpop.xlane.xlu0 %1814 }
 0x814   :  { %v1817_v9 = vsub.f32 %v1809_v4, %v1815_v14 }
 0x816   :  { %v1820_v2 = vmul.f32 1.442695, %v1817_v9 }
 0x818   :  { %2854 = vpow2.f32 %v1820_v2  ;;  %v2802_v2 = vld [vmem:[%s3717_s9] sm:$0xff]  }
 0x81d   :  { %v2853_v5 = vpop.eup %2852 }
 0x81e   :  { %v1822_v6 = vsel %vm967_vm6, %v2853_v5, 0.0 }
 0x81f   :  { %1823 = vadd.xlane.f32.xlu0 %v1822_v6  ;;  %v2804_v6 = vld [vmem:[%s3717_s9 + $0x10] sm:$0xff]  }
 0x822   :  { %v2855_v10 = vpop.eup %2854 }
 0x823   :  { %v1825_v11 = vsel %vm967_vm6, %v2855_v10, 0.0 }
 0x824   :  { %1826 = vadd.xlane.f32.xlu1 %v1825_v11  ;;  %v2806_v11 = vld [vmem:[%s3717_s9 + $0x20] sm:$0xff]  }
 0x8ac   :  { %v1824_v25 = vpop.xlane.xlu0 %1823 }
 0x8ad   :  { %2856 = vrcp.f32 %v1824_v25  ;;  %v2807_v25 = vld [vmem:[%s3717_s9 + $0x28] sm:$0xff]  }
 0x8b1   :  { %v1827_v16 = vpop.xlane.xlu1 %1826 }
 0x8b2   :  { %2858 = vrcp.f32 %v1827_v16  ;;  %v2808_v16 = vld [vmem:[%s3717_s9 + $0x30] sm:$0xff]  }
 0x8b7   :  { %v2857_v51 = vpop.eup %2856 }
 0x8b8   :  { %v1830_v59 = vmul.f32 %v2857_v51, %v2853_v5  ;;  %v2803_v5 = vld [vmem:[%s3717_s9 + $0x8] sm:$0xff]   ;;  %v2809_v51 = vld [vmem:[%s3717_s9 + $0x38] sm:$0xff]  }
 0x8ba   :  { %v1832_v19 = vpack.c.bf16 %v1830_v59, %v1830_v59 }
 0x8bc   :  { %v2859_v26 = vpop.eup %2858  ;;  %2668 = vmatmul.mubr.msk.bf16.vlgmr.msra.gmra.mrb[20].mxu0 %vm992_vm9, %v1832_v19 }
 0x8bd   :  { %v1831_v29 = vmul.f32 %v2859_v26, %v2855_v10  ;;  %2014 = vmatpush1.bf16.msra.mxu0 %v3764_v40  ;;  %2045 = vmatprep.mubr.bf16.mxu0 %v3748_v21  ;;  %v3771_v21 = vld [vmem:[#allocation18_spill] sm:$0xff]  ;;  %v2805_v10 = vld [vmem:[%s3717_s9 + $0x18] sm:$0xff]  }
 0x8be   :  { %2015 = vmatprep.subr.bf16.mxu0 %v3765_v45 }
 0x8bf   :  { %v1833_v47 = vpack.c.bf16 %v1831_v29, %v1831_v29 }
 0x8c1   :  { %2674 = vmatmul.mubr.msk.bf16.vlgmr.msra.gmra.mrb[28].mxu1 %vm992_vm9, %v1833_v47  ;;  %2016 = vmatpush1.bf16.msra.mxu0 %v3766_v3 }
 0x8c2   :  { %2678 = vmatpush3.bf16.msra.mxu1 %v3767_v49  ;;  %2017 = vmatprep.subr.bf16.mxu0 %v3768_v50 }
 0x8c3   :  { %2679 = vmatprep.subr.bf16.mxu1 %v3745_v38  ;;  %2685 = vmatprep.mubr.msk.bf16.mxu1 %vm2903_vm0, %v3745_v38 }
 0x8c5   :  { %2018 = vmatpush1.bf16.msra.mxu0 %v3769_v52 }
 0x8c6   :  { %2680 = vmatpush3.bf16.msra.mxu1 %v3770_v54  ;;  %2019 = vmatprep.subr.bf16.mxu0 %v3771_v21 }
 0x8c7   :  { %2681 = vmatprep.subr.bf16.mxu1 %v3745_v38 }
 0x8c9   :  { %2020 = vmatpush1.bf16.msra.mxu0 %v3772_v55 }
 0x8ca   :  { %2682 = vmatpush3.bf16.msra.mxu1 %v3773_v57  ;;  %2689 = vmatprep.subr.bf16.mxu0 %v3745_v38 }
 0x8cb   :  { %2683 = vmatprep.subr.bf16.mxu1 %v3745_v38 }
 0x8ce   :  { %2684 = vmatpush3.bf16.msra.mxu1 %v3774_v58 }
 0x98f   :  { %v1871_v60 = vpop.f32.mrb[20].mxu0 }
 0x990   :  { %v1928_v63 = vrot.slane %v1871_v60, %v3043_v18  ;;  %v2669_v0 = vpop.f32.mrb[21].mxu0 }
 0x991   :  { %v1874_v7 = vpop.f32.mrb[22].mxu0 }
 0x992   :  { %v1929_v8 = vcombine.high %v1928_v63, %v1928_v63  ;;  %v2670_v13 = vpop.f32.mrb[23].mxu0  ;;  %v1936_v15 = vrot.slane %v1928_v63, %v3043_v18 }
 0x994   :  { %v1943_v41 = vrot.slane %v1929_v8, %v3043_v18  ;;  %v1914_v24 = vpop.f32.mrb[28].mxu1  ;;  %v1944_v27 = vcombine.high %v1936_v15, %v1936_v15 }
 0x995   :  { %v1951_v23 = vrot.slane %v1914_v24, %v3043_v18  ;;  %v2675_v46 = vpop.f32.mrb[29].mxu1 }
 0x996   :  { %v1917_v30 = vpop.f32.mrb[30].mxu1  ;;  %v1968_v1 = vcombine.low %v1936_v15, %v1943_v41 }
 0x997   :  { %v1952_v33 = vcombine.high %v1951_v23, %v1951_v23  ;;  %v1959_v56 = vrot.slane %v1951_v23, %v3043_v18  ;;  %v2676_v34 = vpop.f32.mrb[31].mxu1 }
 0x998   :  { %v1977_v37 = vrot.slane %v1968_v1, %v3043_v18 }
 0x999   :  { %v1966_v53 = vrot.slane %v1952_v33, %v3043_v18  ;;  %v1967_v36 = vcombine.high %v1959_v56, %v1959_v56  ;;  %v1969_v31 = vcombine.low %v1944_v27, %v1959_v56 }
 0x99b   :  { %v1970_v48 = vcombine.low %v1966_v53, %v1967_v36  ;;  %v1984_v4 = vrot.slane %v1969_v31, %v3043_v18 }
 0x99d   :  { %v1991_v20 = vrot.slane %v1970_v48, %v3043_v18  ;;  %v1992_v17 = vcombine.low %v1977_v37, %v1984_v4 }
 0x99f   :  { %v1999_v32 = vrot.slane %v1992_v17, %v3043_v18  ;;  %v2006_v44 = vrot.slane %v1991_v20, %v3043_v18 }
 0x9a1   :  { %v2007_v14 = vcombine.low %v1999_v32, %v2006_v44 }
 0x9a3   :  { %v2009_v9 = vpack.c.bf16 %v2007_v14, %v2007_v14 }
 0x9a5   :  { %2549 = vmatmul.mubr.msk.bf16.vlgmr.msra.gmra.mrb[12].mxu0 %vm152_vm1, %v2009_v9  ;;  %2686 = vmatmul.mubr.msk.bf16.vlgmr.msra.gmra.mrb[32].mxu1 %vm152_vm1, %v2009_v9 }
 0x9a6   :  { %2705 = vmatprep.mubr.msk.bf16.mxu0 %vm2903_vm0, %v3745_v38  ;;  %2690 = vmatpush3.bf16.msra.mxu0 %v2802_v2 }
 0x9a7   :  { %2691 = vmatprep.subr.bf16.mxu0 %v3745_v38 }
 0x9aa   :  { %2692 = vmatpush3.bf16.msra.mxu0 %v2803_v5 }
 0x9ab   :  { %2693 = vmatprep.subr.bf16.mxu0 %v3745_v38 }
 0x9ae   :  { %2694 = vmatpush3.bf16.msra.mxu0 %v2804_v6 }
 0x9af   :  { %2695 = vmatprep.subr.bf16.mxu0 %v3745_v38 }
 0x9b2   :  { %2696 = vmatpush3.bf16.msra.mxu0 %v2805_v10 }
 0x9b3   :  { %2697 = vmatprep.subr.bf16.mxu0 %v3745_v38 }
 0x9b6   :  { %2698 = vmatpush3.bf16.msra.mxu0 %v2806_v11 }
 0x9b7   :  { %2699 = vmatprep.subr.bf16.mxu0 %v3745_v38 }
 0x9ba   :  { %2700 = vmatpush3.bf16.msra.mxu0 %v2807_v25 }
 0x9bb   :  { %2701 = vmatprep.subr.bf16.mxu0 %v3745_v38 }
 0x9be   :  { %2702 = vmatpush3.bf16.msra.mxu0 %v2808_v16 }
 0x9bf   :  { %2703 = vmatprep.subr.bf16.mxu0 %v3745_v38 }
 0x9c2   :  { %2704 = vmatpush3.bf16.msra.mxu0 %v2809_v51 }
 0xa78   :  { %v2047_v59 = vpop.f32.mrb[12].mxu0  ;;  %v2088_v19 = vpop.f32.mrb[32].mxu1 }
 0xa79   :  { %v2714_v26 = vadd.f32 %v3499_v12, %v2047_v59  ;;  %v2049_v29 = vpop.f32.mrb[13].mxu0  ;;  %v2687_v40 = vpop.f32.mrb[33].mxu1  ;;  %v1438_v12 = vadd.f32 %v3528_v35, %v3507_v61  ;;  %v2089_v60 = vadd.f32 %v2088_v19, %v3510_v62  ;;  %v2562_v61 = vld [vmem:[%s3719_s11] ss:$0 sm:$0xff] }
 0xa7a   :  { %v2051_v45 = vpop.f32.mrb[14].mxu0  ;;  %v2091_v47 = vpop.f32.mrb[34].mxu1  ;;  %v2716_v52 = vadd.f32 %v3501_v22, %v2049_v29  ;;  %v2553_v62 = vld [vmem:[%s3718_s10] ss:$0 sm:$0xff]  ;;  %v2278_v35 = vrot.slane %v2562_v61, %v3043_v18  ;;  %s2904_s10 = smov [#allocation3]  }
 0xa7b   :  { %v2551_v3 = vmul.f32 -1.442695, %v2714_v26  ;;  %v2052_v49 = vpop.f32.mrb[15].mxu0  ;;  %v2688_v50 = vpop.f32.mrb[35].mxu1  ;;  %s2473_s11 = sshll.u32 %s2904_s10, 4  ;;  %s2474_s11 = int_to_ptr.vmem [resolvable:$true] %s2473_s11 }
 0xa7c   :  { %v2552_v54 = vmul.f32 -1.442695, %v2716_v52  ;;  %v2279_v33 = vcombine.high %v2278_v35, %v2278_v35  ;;  %v2286_v56 = vrot.slane %v2278_v35, %v3043_v18  ;;  %v2563_v52 = vld [vmem:[#allocation2] ss:$0 sm:$0xff]  ;;  %s2876_s29 = scalar_lea.vmem %s2474_s11, 32  ;;  %p2881_p1 = scmp.lt.s32.totalorder %s2474_s11, %s2474_s11 }
 0xa7d   :  { %2860 = vpow2.f32 %v2551_v3  ;;  %p2877_p0 = scmp.ne.s32.totalorder %s2474_s11, %s2876_s29  ;;  %p2882_p2 = scmp.lt.s32.totalorder %s2876_s29, %s2876_s29 }
 0xa7e   :  { %2862 = vpow2.f32 %v2552_v54  ;;  %v2293_v48 = vrot.slane %v2279_v33, %v3043_v18  ;;  %v2294_v4 = vcombine.high %v2286_v56, %v2286_v56 }
 0xa7f   :  { %p2883_p3 = por %p2882_p2, %p2881_p1 }
 0xa81   :  { %p2884_p4 = pnand %p2883_p3, %p2877_p0 }
 0xa87   :  { %v2861_v21 = vpop.eup %2860 }
 0xa88   :  { %v2098_v55 = vadd.f32 1.0, %v2861_v21  ;;  %v2863_v38 = vpop.eup %2862 }
 0xa89   :  { %v2105_v57 = vadd.f32 1.0, %v2863_v38 }
 0xa8a   :  { %2864 = vrcp.f32 %v2098_v55 }
 0xa8b   :  { %2866 = vrcp.f32 %v2105_v57 }
 0xa94   :  { %v2865_v58 = vpop.eup %2864 }
 0xa95   :  { %v2108_v63 = vmul.f32 %v2865_v58, %v1438_v12  ;;  %v2867_v7 = vpop.eup %2866 }
 0xa96   :  { %v2111_v22 = vsub.f32 1.0, %v2867_v7  ;;  %v2113_v15 = vmul.f32 %v2867_v7, %v3516_v39 }
 0xa97   :  { %v2109_v0 = vadd.f32 %v2108_v63, %v2089_v60 }
 0xa99   :  { %2868 = vtanh.f32 %v2109_v0 }
 0xaa3   :  { %v2869_v8 = vpop.eup %2868 }
 0xaa4   :  { %v2112_v13 = vmul.f32 %v2869_v8, %v2111_v22 }
 0xaa6   :  { %v2114_v41 = vadd.f32 %v2113_v15, %v2112_v13 }
 0xaa8   :  { %v2115_v24 = vpack.c.bf16 %v2114_v41, %v2114_v41 }
 0xaaa   :  { %2706 = vmatmul.mubr.bf16.vlgmr.msra.gmra.mrb[24].mxu0 %v2115_v24 }
 0xb7d   :  { %v2205_v23 = vpop.f32.mrb[24].mxu0 }
 0xb7e   :  { %v2206_v46 = vadd.f32 %v2553_v62, %v2205_v23  ;;  %v2707_v30 = vpop.f32.mrb[25].mxu0 }
 0xb7f   :  { %v2208_v27 = vpop.f32.mrb[26].mxu0 }
 0xb80   :  { %v2211_v1 = vmax.f32 %v2206_v46, 0.0  ;;  %v2708_v39 = vpop.f32.mrb[27].mxu0 }
 0xb82   :  { %v2213_v34 = vcombine.high %v2211_v1, %v2211_v1  ;;  %v2220_v53 = vrot.slane %v2211_v1, %v3043_v18 }
 0xb84   :  { %v2227_v36 = vrot.slane %v2213_v34, %v3043_v18  ;;  %v2228_v31 = vcombine.high %v2220_v53, %v2220_v53  ;;  %v2236_v37 = vrot.slane %v2220_v53, %v3043_v18 }
 0xb86   :  { %v2229_v20 = vcombine.high %v2227_v36, %v2227_v36  ;;  %v2243_v17 = vrot.slane %v2227_v36, %v3043_v18  ;;  %v2250_v32 = vrot.slane %v2228_v31, %v3043_v18  ;;  %v2258_v44 = vcombine.high %v2236_v37, %v2236_v37 }
 0xb87   :  { %v2298_v2 = vmul.f32 %v2286_v56, %v2236_v37 }
 0xb88   :  { %v2257_v14 = vrot.slane %v2229_v20, %v3043_v18  ;;  %v2259_v9 = vcombine.high %v2250_v32, %v2250_v32  ;;  %v2299_v5 = vmul.f32 %v2293_v48, %v2250_v32  ;;  %v2300_v6 = vmul.f32 %v2294_v4, %v2258_v44 }
 0xb89   :  { %v2302_v10 = vmul.f32 %v2293_v48, %v2243_v17 }
 0xb8a   :  { %v2310_v11 = vcombine.low %v2298_v2, %v2299_v5  ;;  %v2301_v25 = vmul.f32 %v2286_v56, %v2259_v9  ;;  %v2303_v16 = vmul.f32 %v2294_v4, %v2257_v14  ;;  %v2324_v59 = vrot.slane %v2300_v6, %v3043_v18 }
 0xb8c   :  { %v2317_v51 = vrot.slane %v2310_v11, %v3043_v18  ;;  %v2333_v19 = vcombine.low %v2301_v25, %v2302_v10  ;;  %v2347_v40 = vrot.slane %v2303_v16, %v3043_v18 }
 0xb8e   :  { %v2325_v26 = vcombine.low %v2317_v51, %v2324_v59  ;;  %v2340_v29 = vrot.slane %v2333_v19, %v3043_v18 }
 0xb90   :  { %v2332_v45 = vrot.slane %v2325_v26, %v3043_v18  ;;  %v2348_v47 = vcombine.low %v2340_v29, %v2347_v40 }
 0xb92   :  { %v2359_v3 = vsel %vm2358_vm10, %v2332_v45, 0.0  ;;  %v2355_v49 = vrot.slane %v2348_v47, %v3043_v18 }
 0xb93   :  { %2360 = vadd.xlane.f32.xlu0 %v2359_v3 }
 0xb94   :  { %v2362_v50 = vsel %vm2358_vm10, %v2355_v49, 0.0 }
 0xb95   :  { %2363 = vadd.xlane.f32.xlu1 %v2362_v50 }
 0xba9   :  { %2372 = vperm.xlu0 %2732, %v2563_v52  }
 0xc20   :  { %v2361_v54 = vpop.xlane.xlu0 %2360 }
 0xc22   :  { %v2364_v21 = vpop.xlane.xlu1 %2363 }
 0xc28   :  { %v2373_v55 = vpop.permute.xlu0 %2372 }
 0xc29   :  { %v2375_v38 = vadd.f32 %v2373_v55, %v2361_v54  ;;  %v2376_v57 = vadd.f32 %v2373_v55, %v2364_v21 }
 0xc2b   :  { %v2382_v12 = vrot.slane %v2375_v38, %v3321_v42  ;;  %v2386_v58 = vrot.slane %v2376_v57, %v3321_v42 }
 0xc2d   :  { %v2387_v60 = vsel %vm943_vm4, %v2386_v58, %v2382_v12 }
 0xc2e   :  { %v2390_v63 = vsel %vm2389_vm11, %v2387_v60, -inf }
 0xc2f   :  { %2391 = vmax.xlane.f32.xlu1 %v2390_v63 }
 0xcbc   :  { %v2392_v18 = vpop.xlane.xlu1 %2391 }
 0xcbd   :  { %v2397_v0 = vrot.slane %v2392_v18, %v3292_v43  ;;  %v2401_v7 = vrot.slane %v2392_v18, %v3295_v28 }
 0xcbf   :  { %v2404_v22 = vsub.f32 %v2375_v38, %v2397_v0  ;;  %v2405_v8 = vsub.f32 %v2376_v57, %v2401_v7 }
 0xcc1   :  { %v2406_v13 = vmul.f32 1.442695, %v2404_v22  ;;  %v2408_v15 = vmul.f32 1.442695, %v2405_v8 }
 0xcc3   :  { %2870 = vpow2.f32 %v2406_v13 }
 0xcc4   :  { %2872 = vpow2.f32 %v2408_v15 }
 0xccd   :  { %v2871_v41 = vpop.eup %2870 }
 0xcce   :  { %v2873_v24 = vpop.eup %2872  ;;  %2413 = vperm.xlu1 %2733, %v2871_v41  }
 0xccf   :  { %2416 = vperm.xlu0 %2732, %v2873_v24  }
 0xd4d   :  { %v2414_v61 = vpop.permute.xlu1 %2413 }
 0xd4e   :  { %v2417_v62 = vpop.permute.xlu0 %2416  ;;  %v2421_v35 = vrot.slane %v2414_v61, %v3321_v42 }
 0xd4f   :  { %v2425_v23 = vrot.slane %v2417_v62, %v3321_v42 }
 0xd51   :  { %v2426_v46 = vsel %vm943_vm4, %v2425_v23, %v2421_v35 }
 0xd52   :  { %v2428_v30 = vsel %vm2389_vm11, %v2426_v46, 0.0 }
 0xd53   :  { %2429 = vadd.xlane.f32.xlu1 %v2428_v30 }
 0xde0   :  { %v2430_v27 = vpop.xlane.xlu1 %2429 }
 0xde1   :  { %2874 = vlog2.f32 %v2430_v27 }
 0xdeb   :  { %v2875_v1 = vpop.eup %2874 }
 0xdec   :  { %v2432_v33 = vmul.f32 0.6931472, %v2875_v1 }
 0xdee   :  { %v2433_v39 = vadd.f32 %v2432_v33, %v2392_v18 }
 0xdf0   :  { %v2438_v56 = vrot.slane %v2433_v39, %v3292_v43  ;;  %v2442_v53 = vrot.slane %v2433_v39, %v3295_v28 }
 0xdf2   :  { %v2445_v34 = vsub.f32 %v2375_v38, %v2438_v56  ;;  %v2446_v36 = vsub.f32 %v2376_v57, %v2442_v53 }
 0xdf4   :  { %2450 = vperm.xlu0 %2732, %v2445_v34  }
 0xdf8   :  { %2453 = vperm.xlu0 %2732, %v2446_v36  }
 0xe73   :  { %v2451_v31 = vpop.permute.xlu0 %2450 }
 0xe74   :  { %v2458_v37 = vrot.slane %v2451_v31, %v3321_v42 }
 0xe76   :  { %2466 = vst.msk [vmem:[#allocation3] sm:$0x1] %vm2465_vm12, %v2458_v37 }
 0xe77   :  { %v2454_v48 = vpop.permute.xlu0 %2453 }
 0xe78   :  { %v2462_v4 = vrot.slane %v2454_v48, %v3321_v42 }
 0xe7a   :  { %2467 = vst.msk [vmem:[#allocation3 + $0x1] sm:$0x1] %vm2465_vm12, %v2462_v4 }
 0xe7b   :  { %2887 = shalt.err (!%p2884_p4)
}
 0xe7c   :  { %s2888_s4 = scalar_lea.hbm %s3721_s13, 32 }
 0xe7d   :  { %p2889_p5 = scmp.ne.s32.totalorder %s3721_s13, %s2888_s4  ;;  %p2892_p6 = scmp.lt.u32.totalorder %s2888_s4, %s3721_s13 }
 0xe7f   :  { %p2894_p7 = pnand %p2892_p6, %p2889_p5 }
 0xe81   :  { %2897 = shalt.err (!%p2894_p7)
}
 0xe82   :  { %s2905_s8 = smov 16   ;;  %s2906_s2 = smov 1  }
 0xe83   :  { %2479 = dma.vmem_to_hbm [thread:$0]  %s2474_s11, 32, %s3721_s13, [#allocation4], %s2905_s8, %s2905_s8, %s2906_s2  }
 0xe84   :  { %2898 = dma.done.wait [#allocation4], 32  }
 0xe85   :  { %2899 = vsyncadd [#allocation4], 4294967264 }
 0xe86   :  { %2483 = vsyncpa [#allocation4], 1 }

</bundles_post_ra>
